<compile_context>
chip_gen: v7x
topology: tpu7x:2x2x1
jax: 0.10.0
libtpu: 0.0.40
codegen_flags: <defaults>
</compile_context>

<pallas_src>
import functools

import jax
import jax.numpy as jnp
from jax.experimental import pallas as pl
from jax.experimental.pallas import tpu as pltpu

# ---------------- model config ----------------
BATCH = 2
IMG = 32
PATCH = 16
IN_CHANS = 3
EMBED = 64
DEPTH = 2
HEADS = 2
HEAD_DIM = EMBED // HEADS
MLP = 4 * EMBED
HEAD_CLASSES = 16          # stands in for the 1000-way DeiT head
NUM_CLASSES = 8            # extra Linear(1000 -> num_classes) equivalent
NUM_PATCHES = (IMG // PATCH) ** 2
NUM_TOKENS = NUM_PATCHES + 1
LN_EPS = 1e-6              # timm VisionTransformer uses LayerNorm(eps=1e-6)
PARAMS_PER_BLOCK = 12


# ---------------- small in-kernel helpers (pure value math, f32) ----------------
def _gelu_tanh(x):
    # TODO(synk): PyTorch nn.GELU defaults to the exact erf form; tanh approximation
    # is used for robust Mosaic lowering (differs at ~1e-3 level).
    return 0.5 * x * (1.0 + jnp.tanh(0.7978845608028654 * (x + 0.044715 * x * x * x)))


def _layernorm(x, g, b, eps):
    mean = jnp.mean(x, axis=-1, keepdims=True)
    xc = x - mean
    var = jnp.mean(xc * xc, axis=-1, keepdims=True)
    return xc * jax.lax.rsqrt(var + eps) * g + b


def _bf16(x):
    # downcast only at MXU inputs; accumulation requested in f32 everywhere.
    return x.astype(jnp.bfloat16)


# ---------------- kernel 1: patch embedding (Conv16x16/s16 as matmul) ----------------
def _patch_embed_kernel(p_ref, w_ref, b_ref, o_ref):
    acc = jnp.dot(_bf16(p_ref[...]), w_ref[...], preferred_element_type=jnp.float32)
    o_ref[...] = (acc + b_ref[...]).astype(o_ref.dtype)


def patch_embed(patches, w, b):
    M, K = patches.shape
    N = w.shape[1]
    return pl.pallas_call(
        _patch_embed_kernel,
        out_shape=jax.ShapeDtypeStruct((M, N), jnp.float32),
        grid=(1,),
        in_specs=[pl.BlockSpec((M, K), lambda i: (0, 0)),
                  pl.BlockSpec((K, N), lambda i: (0, 0)),
                  pl.BlockSpec((1, N), lambda i: (0, 0))],
        out_specs=pl.BlockSpec((M, N), lambda i: (0, 0)),
    )(patches, w.astype(jnp.bfloat16), b.reshape(1, N))


# ---------------- kernel 2: whole transformer encoder (all DEPTH blocks fused) --------
def _block_body(x, ln1g, ln1b, qkvw, qkvb, projw, projb,
                ln2g, ln2b, fc1w, fc1b, fc2w, fc2b, *, heads, head_dim, eps):
    e = x.shape[-1]
    scale = head_dim ** -0.5

    # --- attention (LN fused into the qkv matmul) ---
    xn = _layernorm(x, ln1g, ln1b, eps)
    qkv = jnp.dot(_bf16(xn), qkvw, preferred_element_type=jnp.float32) + qkvb   # (N, 3E) slab
    attn_proj = None
    for h in range(heads):                                   # static loop, heads = 2
        lo = h * head_dim
        q = qkv[:, lo:lo + head_dim] * scale                 # scale folded into q (f32)
        k = qkv[:, e + lo:e + lo + head_dim]
        v = qkv[:, 2 * e + lo:2 * e + lo + head_dim]
        s = jnp.einsum("nd,md->nm", _bf16(q), _bf16(k),
                       preferred_element_type=jnp.float32)   # (N, N), f32 on MXU
        s = s - jnp.max(s, axis=-1, keepdims=True)
        p = jnp.exp(s)
        p = p * pl.reciprocal(jnp.sum(p, axis=-1, keepdims=True), approx=True)
        o_h = jnp.dot(_bf16(p), _bf16(v), preferred_element_type=jnp.float32)   # (N, hd)
        # output projection folded into the head loop: concat_h(o_h) @ W == sum_h o_h @ W[h]
        contrib = jnp.dot(_bf16(o_h), projw[lo:lo + head_dim, :],
                          preferred_element_type=jnp.float32)
        attn_proj = contrib if attn_proj is None else attn_proj + contrib
    x = x + attn_proj + projb

    # --- MLP (LN fused into fc1 matmul, GELU fused) ---
    xn2 = _layernorm(x, ln2g, ln2b, eps)
    h1 = _gelu_tanh(jnp.dot(_bf16(xn2), fc1w, preferred_element_type=jnp.float32) + fc1b)
    h2 = jnp.dot(_bf16(h1), fc2w, preferred_element_type=jnp.float32) + fc2b
    return x + h2


def _encoder_kernel(*refs, depth, heads, head_dim, eps):
    x_ref = refs[0]
    o_ref = refs[-1]
    prm = refs[1:-1]
    x = x_ref[...].astype(jnp.float32)        # (N, E) residual stream, lives in vregs/VMEM
    for d in range(depth):                    # static loop over layers, weights stay resident
        (ln1g, ln1b, qkvw, qkvb, projw, projb,
         ln2g, ln2b, fc1w, fc1b, fc2w, fc2b) = prm[d * PARAMS_PER_BLOCK:(d + 1) * PARAMS_PER_BLOCK]
        x = _block_body(x, ln1g[...], ln1b[...], qkvw[...], qkvb[...],
                        projw[...], projb[...], ln2g[...], ln2b[...],
                        fc1w[...], fc1b[...], fc2w[...], fc2b[...],
                        heads=heads, head_dim=head_dim, eps=eps)
    o_ref[...] = x.astype(o_ref.dtype)


def encoder(x, blocks):
    B, N, E = x.shape
    flat = []
    for blk in blocks:
        flat += [
            blk["ln1_g"].reshape(1, E), blk["ln1_b"].reshape(1, E),
            blk["qkv_w"].astype(jnp.bfloat16), blk["qkv_b"].reshape(1, 3 * E),
            blk["proj_w"].astype(jnp.bfloat16), blk["proj_b"].reshape(1, E),
            blk["ln2_g"].reshape(1, E), blk["ln2_b"].reshape(1, E),
            blk["fc1_w"].astype(jnp.bfloat16), blk["fc1_b"].reshape(1, MLP),
            blk["fc2_w"].astype(jnp.bfloat16), blk["fc2_b"].reshape(1, E),
        ]
    x_spec = pl.BlockSpec((None, N, E), lambda b: (b, 0, 0))       # one batch row per grid step
    in_specs = [x_spec] + [pl.BlockSpec(a.shape, lambda b: (0, 0)) for a in flat]
    kern = functools.partial(_encoder_kernel, depth=len(blocks),
                             heads=HEADS, head_dim=HEAD_DIM, eps=LN_EPS)
    return pl.pallas_call(
        kern,
        out_shape=jax.ShapeDtypeStruct((B, N, E), jnp.float32),
        grid=(B,),
        in_specs=in_specs,
        out_specs=pl.BlockSpec((None, N, E), lambda b: (b, 0, 0)),
        compiler_params=pltpu.CompilerParams(dimension_semantics=("parallel",)),
    )(x, *flat)


# ---------------- kernel 3: final LN + head + extra Linear + Sigmoid -----------------
def _head_kernel(x_ref, g_ref, b_ref, hw_ref, hb_ref, lw_ref, lb_ref, o_ref, *, eps):
    xn = _layernorm(x_ref[...].astype(jnp.float32), g_ref[...], b_ref[...], eps)
    logits = jnp.dot(_bf16(xn), hw_ref[...], preferred_element_type=jnp.float32) + hb_ref[...]
    out = jnp.dot(_bf16(logits), lw_ref[...], preferred_element_type=jnp.float32) + lb_ref[...]
    o_ref[...] = jax.nn.sigmoid(out).astype(o_ref.dtype)


def classifier_head(cls_tokens, params):
    B, E = cls_tokens.shape
    kern = functools.partial(_head_kernel, eps=LN_EPS)
    return pl.pallas_call(
        kern,
        out_shape=jax.ShapeDtypeStruct((B, NUM_CLASSES), jnp.float32),
        grid=(1,),
        in_specs=[pl.BlockSpec((B, E), lambda i: (0, 0)),
                  pl.BlockSpec((1, E), lambda i: (0, 0)),
                  pl.BlockSpec((1, E), lambda i: (0, 0)),
                  pl.BlockSpec((E, HEAD_CLASSES), lambda i: (0, 0)),
                  pl.BlockSpec((1, HEAD_CLASSES), lambda i: (0, 0)),
                  pl.BlockSpec((HEAD_CLASSES, NUM_CLASSES), lambda i: (0, 0)),
                  pl.BlockSpec((1, NUM_CLASSES), lambda i: (0, 0))],
        out_specs=pl.BlockSpec((B, NUM_CLASSES), lambda i: (0, 0)),
    )(cls_tokens,
      params["ln_g"].reshape(1, E), params["ln_b"].reshape(1, E),
      params["head_w"].astype(jnp.bfloat16), params["head_b"].reshape(1, HEAD_CLASSES),
      params["last_w"].astype(jnp.bfloat16), params["last_b"].reshape(1, NUM_CLASSES))


# ---------------- parameters ----------------
def init_params(key):
    keys = iter(jax.random.split(key, 64))

    def nrm(shape, scale=0.02):
        return scale * jax.random.normal(next(keys), shape, dtype=jnp.float32)

    def zeros(shape):
        return jnp.zeros(shape, jnp.float32)

    def ones(shape):
        return jnp.ones(shape, jnp.float32)

    params = dict(
        patch_w=nrm((IN_CHANS * PATCH * PATCH, EMBED)),   # conv16x16/s16 as matmul
        patch_b=zeros((EMBED,)),
        cls_token=nrm((1, 1, EMBED)),
        pos_embed=nrm((1, NUM_TOKENS, EMBED)),
        ln_g=ones((EMBED,)),
        ln_b=zeros((EMBED,)),
        head_w=nrm((EMBED, HEAD_CLASSES)),
        head_b=zeros((HEAD_CLASSES,)),
        last_w=nrm((HEAD_CLASSES, NUM_CLASSES)),          # extra Linear(1000, num_classes)
        last_b=zeros((NUM_CLASSES,)),
        blocks=[],
    )
    for _ in range(DEPTH):
        params["blocks"].append(dict(
            ln1_g=ones((EMBED,)), ln1_b=zeros((EMBED,)),
            qkv_w=nrm((EMBED, 3 * EMBED)), qkv_b=zeros((3 * EMBED,)),
            proj_w=nrm((EMBED, EMBED)), proj_b=zeros((EMBED,)),
            ln2_g=ones((EMBED,)), ln2_b=zeros((EMBED,)),
            fc1_w=nrm((EMBED, MLP)), fc1_b=zeros((MLP,)),
            fc2_w=nrm((MLP, EMBED)), fc2_b=zeros((EMBED,)),
        ))
    return params


# ---------------- forward pass (3 pallas_calls total) ----------------
def deit_forward(x_nchw, params):
    B, C, H, W = x_nchw.shape
    p = PATCH
    nH, nW = H // p, W // p

    # Patch embedding: Conv2d(k=16, s=16) == patchify + matmul (patchify is cheap glue).
    patches = (
        x_nchw.reshape(B, C, nH, p, nW, p)
        .transpose(0, 2, 4, 1, 3, 5)                # matches conv weight flatten order
        .reshape(B * nH * nW, C * p * p)
    )
    tok = patch_embed(patches, params["patch_w"], params["patch_b"]).reshape(B, nH * nW, EMBED)

    # CLS token + positional embedding (tiny JAX glue on a ~2.5 KB tensor).
    cls = jnp.broadcast_to(params["cls_token"], (B, 1, EMBED))
    x = jnp.concatenate([cls, tok], axis=1) + params["pos_embed"]   # (B, N, E)

    # All transformer blocks in one fused, VMEM-resident kernel.
    x = encoder(x, params["blocks"])

    # LayerNorm is per-row, so applying it only to the CLS rows inside the head kernel
    # matches norm-then-select of the reference model.
    cls_out = x[:, 0, :]
    return classifier_head(cls_out, params)      # final LN + head + last Linear + Sigmoid


if __name__ == "__main__":
    key = jax.random.PRNGKey(0)
    pkey, xkey = jax.random.split(key)
    params = init_params(pkey)
    x = jax.random.normal(xkey, (BATCH, IN_CHANS, IMG, IMG), dtype=jnp.float32)

    out = jax.jit(deit_forward)(x, params)
    out = jax.block_until_ready(out)

    assert out.shape == (BATCH, NUM_CLASSES), out.shape
    assert bool(jnp.all(jnp.isfinite(out)))
    assert bool(jnp.all((out >= 0.0) & (out <= 1.0)))   # sigmoid range
    print("KERNEL_OK")
</pallas_src>

<mosaic_0001>
module attributes {stable_mosaic.version = 11 : i64} {
  func.func @_patch_embed_kernel(%arg0: i32, %arg1: memref<8x768xf32, #tpu.memory_space<vmem>>, %arg2: memref<768x64xbf16, #tpu.memory_space<vmem>>, %arg3: memref<1x64xf32, #tpu.memory_space<vmem>>, %arg4: memref<8x64xf32, #tpu.memory_space<vmem>>) attributes {dimension_semantics = [#tpu.dimension_semantics<arbitrary>], iteration_bounds = array<i64: 1>, scalar_prefetch = 0 : i64, scratch_operands = 0 : i64, tpu.core_type = #tpu.core_type<tc>, window_params = [{pipeline_mode = #tpu.pipeline_mode<synchronous>, transform_indices = @transform_0, window_bounds = array<i64: 8, 768>}, {pipeline_mode = #tpu.pipeline_mode<synchronous>, transform_indices = @transform_1, window_bounds = array<i64: 768, 64>}, {pipeline_mode = #tpu.pipeline_mode<synchronous>, transform_indices = @transform_2, window_bounds = array<i64: 1, 64>}, {pipeline_mode = #tpu.pipeline_mode<synchronous>, transform_indices = @transform_3, window_bounds = array<i64: 8, 64>}]} {
    %c0 = arith.constant 0 : index
    %c0_0 = arith.constant 0 : index
    %0 = vector.load %arg1[%c0, %c0_0] : memref<8x768xf32, #tpu.memory_space<vmem>>, vector<8x768xf32>
    %1 = arith.truncf %0 : vector<8x768xf32> to vector<8x768xbf16>
    %c0_1 = arith.constant 0 : index
    %c0_2 = arith.constant 0 : index
    %2 = vector.load %arg2[%c0_1, %c0_2] : memref<768x64xbf16, #tpu.memory_space<vmem>>, vector<768x64xbf16>
    %cst = arith.constant dense<0.000000e+00> : vector<8x64xf32>
    %3 = tpu.matmul %1, %2, %cst {dimension_numbers = #tpu.dot_dimension_numbers<[1], [0], [0], [1], [0, 0, 1, 1], [], []>} : vector<8x768xbf16>, vector<768x64xbf16>, vector<8x64xf32> -> vector<8x64xf32>
    %c0_3 = arith.constant 0 : index
    %c0_4 = arith.constant 0 : index
    %4 = vector.load %arg3[%c0_3, %c0_4] : memref<1x64xf32, #tpu.memory_space<vmem>>, vector<1x64xf32>
    %5 = vector.broadcast %4 : vector<1x64xf32> to vector<8x64xf32>
    %6 = arith.addf %3, %5 : vector<8x64xf32>
    %c0_5 = arith.constant 0 : index
    %c0_6 = arith.constant 0 : index
    %7 = vector.load %arg4[%c0_5, %c0_6] : memref<8x64xf32, #tpu.memory_space<vmem>>, vector<8x64xf32>
    tpu.vector_store %arg4[%c0_5, %c0_6], %6 {strides = array<i32>} : memref<8x64xf32, #tpu.memory_space<vmem>>, vector<8x64xf32>,
    return
  }
  func.func @transform_0(%arg0: i32) -> (i32, i32) {
    %c0_i32 = arith.constant 0 : i32
    %c0_i32_0 = arith.constant 0 : i32
    %c0_i32_1 = arith.constant 0 : i32
    return %c0_i32, %c0_i32_0 : i32, i32
  }
  func.func @transform_1(%arg0: i32) -> (i32, i32) {
    %c0_i32 = arith.constant 0 : i32
    %c0_i32_0 = arith.constant 0 : i32
    %c0_i32_1 = arith.constant 0 : i32
    return %c0_i32, %c0_i32_0 : i32, i32
  }
  func.func @transform_2(%arg0: i32) -> (i32, i32) {
    %c0_i32 = arith.constant 0 : i32
    %c0_i32_0 = arith.constant 0 : i32
    %c0_i32_1 = arith.constant 0 : i32
    return %c0_i32, %c0_i32_0 : i32, i32
  }
  func.func @transform_3(%arg0: i32) -> (i32, i32) {
    %c0_i32 = arith.constant 0 : i32
    %c0_i32_0 = arith.constant 0 : i32
    %c0_i32_1 = arith.constant 0 : i32
    return %c0_i32, %c0_i32_0 : i32, i32
  }
}

module attributes {stable_mosaic.version = 11 : i64} {
  func.func @_encoder_kernel(%arg0: i32, %arg1: memref<1x5x64xf32, #tpu.memory_space<vmem>>, %arg2: memref<1x64xf32, #tpu.memory_space<vmem>>, %arg3: memref<1x64xf32, #tpu.memory_space<vmem>>, %arg4: memref<64x192xbf16, #tpu.memory_space<vmem>>, %arg5: memref<1x192xf32, #tpu.memory_space<vmem>>, %arg6: memref<64x64xbf16, #tpu.memory_space<vmem>>, %arg7: memref<1x64xf32, #tpu.memory_space<vmem>>, %arg8: memref<1x64xf32, #tpu.memory_space<vmem>>, %arg9: memref<1x64xf32, #tpu.memory_space<vmem>>, %arg10: memref<64x256xbf16, #tpu.memory_space<vmem>>, %arg11: memref<1x256xf32, #tpu.memory_space<vmem>>, %arg12: memref<256x64xbf16, #tpu.memory_space<vmem>>, %arg13: memref<1x64xf32, #tpu.memory_space<vmem>>, %arg14: memref<1x64xf32, #tpu.memory_space<vmem>>, %arg15: memref<1x64xf32, #tpu.memory_space<vmem>>, %arg16: memref<64x192xbf16, #tpu.memory_space<vmem>>, %arg17: memref<1x192xf32, #tpu.memory_space<vmem>>, %arg18: memref<64x64xbf16, #tpu.memory_space<vmem>>, %arg19: memref<1x64xf32, #tpu.memory_space<vmem>>, %arg20: memref<1x64xf32, #tpu.memory_space<vmem>>, %arg21: memref<1x64xf32, #tpu.memory_space<vmem>>, %arg22: memref<64x256xbf16, #tpu.memory_space<vmem>>, %arg23: memref<1x256xf32, #tpu.memory_space<vmem>>, %arg24: memref<256x64xbf16, #tpu.memory_space<vmem>>, %arg25: memref<1x64xf32, #tpu.memory_space<vmem>>, %arg26: memref<1x5x64xf32, #tpu.memory_space<vmem>>) attributes {dimension_semantics = [#tpu.dimension_semantics<parallel>], iteration_bounds = array<i64: 2>, scalar_prefetch = 0 : i64, scratch_operands = 0 : i64, tpu.core_type = #tpu.core_type<tc>, window_params = [{transform_indices = @transform_0, window_bounds = array<i64: 1, 5, 64>}, {pipeline_mode = #tpu.pipeline_mode<synchronous>, transform_indices = @transform_1, window_bounds = array<i64: 1, 64>}, {pipeline_mode = #tpu.pipeline_mode<synchronous>, transform_indices = @transform_2, window_bounds = array<i64: 1, 64>}, {pipeline_mode = #tpu.pipeline_mode<synchronous>, transform_indices = @transform_3, window_bounds = array<i64: 64, 192>}, {pipeline_mode = #tpu.pipeline_mode<synchronous>, transform_indices = @transform_4, window_bounds = array<i64: 1, 192>}, {pipeline_mode = #tpu.pipeline_mode<synchronous>, transform_indices = @transform_5, window_bounds = array<i64: 64, 64>}, {pipeline_mode = #tpu.pipeline_mode<synchronous>, transform_indices = @transform_6, window_bounds = array<i64: 1, 64>}, {pipeline_mode = #tpu.pipeline_mode<synchronous>, transform_indices = @transform_7, window_bounds = array<i64: 1, 64>}, {pipeline_mode = #tpu.pipeline_mode<synchronous>, transform_indices = @transform_8, window_bounds = array<i64: 1, 64>}, {pipeline_mode = #tpu.pipeline_mode<synchronous>, transform_indices = @transform_9, window_bounds = array<i64: 64, 256>}, {pipeline_mode = #tpu.pipeline_mode<synchronous>, transform_indices = @transform_10, window_bounds = array<i64: 1, 256>}, {pipeline_mode = #tpu.pipeline_mode<synchronous>, transform_indices = @transform_11, window_bounds = array<i64: 256, 64>}, {pipeline_mode = #tpu.pipeline_mode<synchronous>, transform_indices = @transform_12, window_bounds = array<i64: 1, 64>}, {pipeline_mode = #tpu.pipeline_mode<synchronous>, transform_indices = @transform_13, window_bounds = array<i64: 1, 64>}, {pipeline_mode = #tpu.pipeline_mode<synchronous>, transform_indices = @transform_14, window_bounds = array<i64: 1, 64>}, {pipeline_mode = #tpu.pipeline_mode<synchronous>, transform_indices = @transform_15, window_bounds = array<i64: 64, 192>}, {pipeline_mode = #tpu.pipeline_mode<synchronous>, transform_indices = @transform_16, window_bounds = array<i64: 1, 192>}, {pipeline_mode = #tpu.pipeline_mode<synchronous>, transform_indices = @transform_17, window_bounds = array<i64: 64, 64>}, {pipeline_mode = #tpu.pipeline_mode<synchronous>, transform_indices = @transform_18, window_bounds = array<i64: 1, 64>}, {pipeline_mode = #tpu.pipeline_mode<synchronous>, transform_indices = @transform_19, window_bounds = array<i64: 1, 64>}, {pipeline_mode = #tpu.pipeline_mode<synchronous>, transform_indices = @transform_20, window_bounds = array<i64: 1, 64>}, {pipeline_mode = #tpu.pipeline_mode<synchronous>, transform_indices = @transform_21, window_bounds = array<i64: 64, 256>}, {pipeline_mode = #tpu.pipeline_mode<synchronous>, transform_indices = @transform_22, window_bounds = array<i64: 1, 256>}, {pipeline_mode = #tpu.pipeline_mode<synchronous>, transform_indices = @transform_23, window_bounds = array<i64: 256, 64>}, {pipeline_mode = #tpu.pipeline_mode<synchronous>, transform_indices = @transform_24, window_bounds = array<i64: 1, 64>}, {transform_indices = @transform_25, window_bounds = array<i64: 1, 5, 64>}]} {
    %c0 = arith.constant 0 : index
    %c0_0 = arith.constant 0 : index
    %c0_1 = arith.constant 0 : index
    %0 = vector.load %arg1[%c0, %c0_0, %c0_1] : memref<1x5x64xf32, #tpu.memory_space<vmem>>, vector<1x5x64xf32>
    %1 = vector.shape_cast %0 : vector<1x5x64xf32> to vector<5x64xf32>
    %c0_2 = arith.constant 0 : index
    %c0_3 = arith.constant 0 : index
    %2 = vector.load %arg2[%c0_2, %c0_3] : memref<1x64xf32, #tpu.memory_space<vmem>>, vector<1x64xf32>
    %c0_4 = arith.constant 0 : index
    %c0_5 = arith.constant 0 : index
    %3 = vector.load %arg3[%c0_4, %c0_5] : memref<1x64xf32, #tpu.memory_space<vmem>>, vector<1x64xf32>
    %c0_6 = arith.constant 0 : index
    %c0_7 = arith.constant 0 : index
    %4 = vector.load %arg4[%c0_6, %c0_7] : memref<64x192xbf16, #tpu.memory_space<vmem>>, vector<64x192xbf16>
    %c0_8 = arith.constant 0 : index
    %c0_9 = arith.constant 0 : index
    %5 = vector.load %arg5[%c0_8, %c0_9] : memref<1x192xf32, #tpu.memory_space<vmem>>, vector<1x192xf32>
    %c0_10 = arith.constant 0 : index
    %c0_11 = arith.constant 0 : index
    %6 = vector.load %arg6[%c0_10, %c0_11] : memref<64x64xbf16, #tpu.memory_space<vmem>>, vector<64x64xbf16>
    %c0_12 = arith.constant 0 : index
    %c0_13 = arith.constant 0 : index
    %7 = vector.load %arg7[%c0_12, %c0_13] : memref<1x64xf32, #tpu.memory_space<vmem>>, vector<1x64xf32>
    %c0_14 = arith.constant 0 : index
    %c0_15 = arith.constant 0 : index
    %8 = vector.load %arg8[%c0_14, %c0_15] : memref<1x64xf32, #tpu.memory_space<vmem>>, vector<1x64xf32>
    %c0_16 = arith.constant 0 : index
    %c0_17 = arith.constant 0 : index
    %9 = vector.load %arg9[%c0_16, %c0_17] : memref<1x64xf32, #tpu.memory_space<vmem>>, vector<1x64xf32>
    %c0_18 = arith.constant 0 : index
    %c0_19 = arith.constant 0 : index
    %10 = vector.load %arg10[%c0_18, %c0_19] : memref<64x256xbf16, #tpu.memory_space<vmem>>, vector<64x256xbf16>
    %c0_20 = arith.constant 0 : index
    %c0_21 = arith.constant 0 : index
    %11 = vector.load %arg11[%c0_20, %c0_21] : memref<1x256xf32, #tpu.memory_space<vmem>>, vector<1x256xf32>
    %c0_22 = arith.constant 0 : index
    %c0_23 = arith.constant 0 : index
    %12 = vector.load %arg12[%c0_22, %c0_23] : memref<256x64xbf16, #tpu.memory_space<vmem>>, vector<256x64xbf16>
    %c0_24 = arith.constant 0 : index
    %c0_25 = arith.constant 0 : index
    %13 = vector.load %arg13[%c0_24, %c0_25] : memref<1x64xf32, #tpu.memory_space<vmem>>, vector<1x64xf32>
    %cst = arith.constant dense<0.000000e+00> : vector<5xf32>
    %14 = vector.multi_reduction <add>, %1, %cst [1] : vector<5x64xf32> to vector<5xf32>
    %15 = vector.shape_cast %14 : vector<5xf32> to vector<5x1xf32>
    %cst_26 = arith.constant 6.400000e+01 : f32
    %16 = vector.broadcast %cst_26 : f32 to vector<5x1xf32>
    %17 = arith.divf %15, %16 : vector<5x1xf32>
    %18 = vector.broadcast %17 : vector<5x1xf32> to vector<5x64xf32>
    %19 = arith.subf %1, %18 : vector<5x64xf32>
    %20 = arith.mulf %19, %19 : vector<5x64xf32>
    %cst_27 = arith.constant dense<0.000000e+00> : vector<5xf32>
    %21 = vector.multi_reduction <add>, %20, %cst_27 [1] : vector<5x64xf32> to vector<5xf32>
    %22 = vector.shape_cast %21 : vector<5xf32> to vector<5x1xf32>
    %cst_28 = arith.constant 6.400000e+01 : f32
    %23 = vector.broadcast %cst_28 : f32 to vector<5x1xf32>
    %24 = arith.divf %22, %23 : vector<5x1xf32>
    %cst_29 = arith.constant 9.99999997E-7 : f32
    %25 = vector.broadcast %cst_29 : f32 to vector<5x1xf32>
    %26 = arith.addf %24, %25 : vector<5x1xf32>
    %27 = math.rsqrt %26 : vector<5x1xf32>
    %28 = vector.broadcast %27 : vector<5x1xf32> to vector<5x64xf32>
    %29 = arith.mulf %19, %28 : vector<5x64xf32>
    %30 = vector.broadcast %2 : vector<1x64xf32> to vector<5x64xf32>
    %31 = arith.mulf %29, %30 : vector<5x64xf32>
    %32 = vector.broadcast %3 : vector<1x64xf32> to vector<5x64xf32>
    %33 = arith.addf %31, %32 : vector<5x64xf32>
    %34 = arith.truncf %33 : vector<5x64xf32> to vector<5x64xbf16>
    %cst_30 = arith.constant dense<0.000000e+00> : vector<5x192xf32>
    %35 = tpu.matmul %34, %4, %cst_30 {dimension_numbers = #tpu.dot_dimension_numbers<[1], [0], [0], [1], [0, 0, 1, 1], [], []>} : vector<5x64xbf16>, vector<64x192xbf16>, vector<5x192xf32> -> vector<5x192xf32>
    %36 = vector.broadcast %5 : vector<1x192xf32> to vector<5x192xf32>
    %37 = arith.addf %35, %36 : vector<5x192xf32>
    %38 = vector.extract_strided_slice %37 {offsets = [0, 0], sizes = [5, 32], strides = [1, 1]} : vector<5x192xf32> to vector<5x32xf32>
    %cst_31 = arith.constant 0.176776692 : f32
    %39 = vector.broadcast %cst_31 : f32 to vector<5x32xf32>
    %40 = arith.mulf %38, %39 : vector<5x32xf32>
    %41 = vector.extract_strided_slice %37 {offsets = [0, 64], sizes = [5, 32], strides = [1, 1]} : vector<5x192xf32> to vector<5x32xf32>
    %42 = vector.extract_strided_slice %37 {offsets = [0, 128], sizes = [5, 32], strides = [1, 1]} : vector<5x192xf32> to vector<5x32xf32>
    %43 = arith.truncf %40 : vector<5x32xf32> to vector<5x32xbf16>
    %44 = arith.truncf %41 : vector<5x32xf32> to vector<5x32xbf16>
    "tpu.trace_start"() <{level = 10 : i32, message = "nd,md->nm"}> : () -> ()
    %cst_32 = arith.constant dense<0.000000e+00> : vector<5x5xf32>
    %45 = tpu.matmul %43, %44, %cst_32 {dimension_numbers = #tpu.dot_dimension_numbers<[1], [1], [0], [0], [0, 0, 1, 0], [], []>} : vector<5x32xbf16>, vector<5x32xbf16>, vector<5x5xf32> -> vector<5x5xf32>
    "tpu.trace_stop"() : () -> ()
    %cst_33 = arith.constant dense<0xFF800000> : vector<5xf32>
    %46 = vector.multi_reduction <maximumf>, %45, %cst_33 [1] : vector<5x5xf32> to vector<5xf32>
    %47 = vector.shape_cast %46 : vector<5xf32> to vector<5x1xf32>
    %48 = vector.broadcast %47 : vector<5x1xf32> to vector<5x5xf32>
    %49 = arith.subf %45, %48 : vector<5x5xf32>
    %50 = math.exp %49 : vector<5x5xf32>
    %cst_34 = arith.constant dense<0.000000e+00> : vector<5xf32>
    %51 = vector.multi_reduction <add>, %50, %cst_34 [1] : vector<5x5xf32> to vector<5xf32>
    %52 = vector.shape_cast %51 : vector<5xf32> to vector<5x1xf32>
    %53 = tpu.reciprocal %52 {approx = true} : vector<5x1xf32> -> vector<5x1xf32>
    %54 = vector.broadcast %53 : vector<5x1xf32> to vector<5x5xf32>
    %55 = arith.mulf %50, %54 : vector<5x5xf32>
    %56 = arith.truncf %55 : vector<5x5xf32> to vector<5x5xbf16>
    %57 = arith.truncf %42 : vector<5x32xf32> to vector<5x32xbf16>
    %cst_35 = arith.constant dense<0.000000e+00> : vector<5x32xf32>
    %58 = tpu.matmul %56, %57, %cst_35 {dimension_numbers = #tpu.dot_dimension_numbers<[1], [0], [0], [1], [0, 0, 1, 1], [], []>} : vector<5x5xbf16>, vector<5x32xbf16>, vector<5x32xf32> -> vector<5x32xf32>
    %59 = arith.truncf %58 : vector<5x32xf32> to vector<5x32xbf16>
    %60 = vector.extract_strided_slice %6 {offsets = [0, 0], sizes = [32, 64], strides = [1, 1]} : vector<64x64xbf16> to vector<32x64xbf16>
    %cst_36 = arith.constant dense<0.000000e+00> : vector<5x64xf32>
    %61 = tpu.matmul %59, %60, %cst_36 {dimension_numbers = #tpu.dot_dimension_numbers<[1], [0], [0], [1], [0, 0, 1, 1], [], []>} : vector<5x32xbf16>, vector<32x64xbf16>, vector<5x64xf32> -> vector<5x64xf32>
    %62 = vector.extract_strided_slice %37 {offsets = [0, 32], sizes = [5, 32], strides = [1, 1]} : vector<5x192xf32> to vector<5x32xf32>
    %cst_37 = arith.constant 0.176776692 : f32
    %63 = vector.broadcast %cst_37 : f32 to vector<5x32xf32>
    %64 = arith.mulf %62, %63 : vector<5x32xf32>
    %65 = vector.extract_strided_slice %37 {offsets = [0, 96], sizes = [5, 32], strides = [1, 1]} : vector<5x192xf32> to vector<5x32xf32>
    %66 = vector.extract_strided_slice %37 {offsets = [0, 160], sizes = [5, 32], strides = [1, 1]} : vector<5x192xf32> to vector<5x32xf32>
    %67 = arith.truncf %64 : vector<5x32xf32> to vector<5x32xbf16>
    %68 = arith.truncf %65 : vector<5x32xf32> to vector<5x32xbf16>
    "tpu.trace_start"() <{level = 10 : i32, message = "nd,md->nm"}> : () -> ()
    %cst_38 = arith.constant dense<0.000000e+00> : vector<5x5xf32>
    %69 = tpu.matmul %67, %68, %cst_38 {dimension_numbers = #tpu.dot_dimension_numbers<[1], [1], [0], [0], [0, 0, 1, 0], [], []>} : vector<5x32xbf16>, vector<5x32xbf16>, vector<5x5xf32> -> vector<5x5xf32>
    "tpu.trace_stop"() : () -> ()
    %cst_39 = arith.constant dense<0xFF800000> : vector<5xf32>
    %70 = vector.multi_reduction <maximumf>, %69, %cst_39 [1] : vector<5x5xf32> to vector<5xf32>
    %71 = vector.shape_cast %70 : vector<5xf32> to vector<5x1xf32>
    %72 = vector.broadcast %71 : vector<5x1xf32> to vector<5x5xf32>
    %73 = arith.subf %69, %72 : vector<5x5xf32>
    %74 = math.exp %73 : vector<5x5xf32>
    %cst_40 = arith.constant dense<0.000000e+00> : vector<5xf32>
    %75 = vector.multi_reduction <add>, %74, %cst_40 [1] : vector<5x5xf32> to vector<5xf32>
    %76 = vector.shape_cast %75 : vector<5xf32> to vector<5x1xf32>
    %77 = tpu.reciprocal %76 {approx = true} : vector<5x1xf32> -> vector<5x1xf32>
    %78 = vector.broadcast %77 : vector<5x1xf32> to vector<5x5xf32>
    %79 = arith.mulf %74, %78 : vector<5x5xf32>
    %80 = arith.truncf %79 : vector<5x5xf32> to vector<5x5xbf16>
    %81 = arith.truncf %66 : vector<5x32xf32> to vector<5x32xbf16>
    %cst_41 = arith.constant dense<0.000000e+00> : vector<5x32xf32>
    %82 = tpu.matmul %80, %81, %cst_41 {dimension_numbers = #tpu.dot_dimension_numbers<[1], [0], [0], [1], [0, 0, 1, 1], [], []>} : vector<5x5xbf16>, vector<5x32xbf16>, vector<5x32xf32> -> vector<5x32xf32>
    %83 = arith.truncf %82 : vector<5x32xf32> to vector<5x32xbf16>
    %84 = vector.extract_strided_slice %6 {offsets = [32, 0], sizes = [32, 64], strides = [1, 1]} : vector<64x64xbf16> to vector<32x64xbf16>
    %cst_42 = arith.constant dense<0.000000e+00> : vector<5x64xf32>
    %85 = tpu.matmul %83, %84, %cst_42 {dimension_numbers = #tpu.dot_dimension_numbers<[1], [0], [0], [1], [0, 0, 1, 1], [], []>} : vector<5x32xbf16>, vector<32x64xbf16>, vector<5x64xf32> -> vector<5x64xf32>
    %86 = arith.addf %61, %85 : vector<5x64xf32>
    %87 = arith.addf %1, %86 : vector<5x64xf32>
    %88 = vector.broadcast %7 : vector<1x64xf32> to vector<5x64xf32>
    %89 = arith.addf %87, %88 : vector<5x64xf32>
    %cst_43 = arith.constant dense<0.000000e+00> : vector<5xf32>
    %90 = vector.multi_reduction <add>, %89, %cst_43 [1] : vector<5x64xf32> to vector<5xf32>
    %91 = vector.shape_cast %90 : vector<5xf32> to vector<5x1xf32>
    %cst_44 = arith.constant 6.400000e+01 : f32
    %92 = vector.broadcast %cst_44 : f32 to vector<5x1xf32>
    %93 = arith.divf %91, %92 : vector<5x1xf32>
    %94 = vector.broadcast %93 : vector<5x1xf32> to vector<5x64xf32>
    %95 = arith.subf %89, %94 : vector<5x64xf32>
    %96 = arith.mulf %95, %95 : vector<5x64xf32>
    %cst_45 = arith.constant dense<0.000000e+00> : vector<5xf32>
    %97 = vector.multi_reduction <add>, %96, %cst_45 [1] : vector<5x64xf32> to vector<5xf32>
    %98 = vector.shape_cast %97 : vector<5xf32> to vector<5x1xf32>
    %cst_46 = arith.constant 6.400000e+01 : f32
    %99 = vector.broadcast %cst_46 : f32 to vector<5x1xf32>
    %100 = arith.divf %98, %99 : vector<5x1xf32>
    %cst_47 = arith.constant 9.99999997E-7 : f32
    %101 = vector.broadcast %cst_47 : f32 to vector<5x1xf32>
    %102 = arith.addf %100, %101 : vector<5x1xf32>
    %103 = math.rsqrt %102 : vector<5x1xf32>
    %104 = vector.broadcast %103 : vector<5x1xf32> to vector<5x64xf32>
    %105 = arith.mulf %95, %104 : vector<5x64xf32>
    %106 = vector.broadcast %8 : vector<1x64xf32> to vector<5x64xf32>
    %107 = arith.mulf %105, %106 : vector<5x64xf32>
    %108 = vector.broadcast %9 : vector<1x64xf32> to vector<5x64xf32>
    %109 = arith.addf %107, %108 : vector<5x64xf32>
    %110 = arith.truncf %109 : vector<5x64xf32> to vector<5x64xbf16>
    %cst_48 = arith.constant dense<0.000000e+00> : vector<5x256xf32>
    %111 = tpu.matmul %110, %10, %cst_48 {dimension_numbers = #tpu.dot_dimension_numbers<[1], [0], [0], [1], [0, 0, 1, 1], [], []>} : vector<5x64xbf16>, vector<64x256xbf16>, vector<5x256xf32> -> vector<5x256xf32>
    %112 = vector.broadcast %11 : vector<1x256xf32> to vector<5x256xf32>
    %113 = arith.addf %111, %112 : vector<5x256xf32>
    %cst_49 = arith.constant 5.000000e-01 : f32
    %114 = vector.broadcast %cst_49 : f32 to vector<5x256xf32>
    %115 = arith.mulf %114, %113 : vector<5x256xf32>
    %cst_50 = arith.constant 4.471500e-02 : f32
    %116 = vector.broadcast %cst_50 : f32 to vector<5x256xf32>
    %117 = arith.mulf %116, %113 : vector<5x256xf32>
    %118 = arith.mulf %117, %113 : vector<5x256xf32>
    %119 = arith.mulf %118, %113 : vector<5x256xf32>
    %120 = arith.addf %113, %119 : vector<5x256xf32>
    %cst_51 = arith.constant 0.797884583 : f32
    %121 = vector.broadcast %cst_51 : f32 to vector<5x256xf32>
    %122 = arith.mulf %121, %120 : vector<5x256xf32>
    %123 = math.tanh %122 : vector<5x256xf32>
    %cst_52 = arith.constant 1.000000e+00 : f32
    %124 = vector.broadcast %cst_52 : f32 to vector<5x256xf32>
    %125 = arith.addf %124, %123 : vector<5x256xf32>
    %126 = arith.mulf %115, %125 : vector<5x256xf32>
    %127 = arith.truncf %126 : vector<5x256xf32> to vector<5x256xbf16>
    %cst_53 = arith.constant dense<0.000000e+00> : vector<5x64xf32>
    %128 = tpu.matmul %127, %12, %cst_53 {dimension_numbers = #tpu.dot_dimension_numbers<[1], [0], [0], [1], [0, 0, 1, 1], [], []>} : vector<5x256xbf16>, vector<256x64xbf16>, vector<5x64xf32> -> vector<5x64xf32>
    %129 = vector.broadcast %13 : vector<1x64xf32> to vector<5x64xf32>
    %130 = arith.addf %128, %129 : vector<5x64xf32>
    %131 = arith.addf %89, %130 : vector<5x64xf32>
    %c0_54 = arith.constant 0 : index
    %c0_55 = arith.constant 0 : index
    %132 = vector.load %arg14[%c0_54, %c0_55] : memref<1x64xf32, #tpu.memory_space<vmem>>, vector<1x64xf32>
    %c0_56 = arith.constant 0 : index
    %c0_57 = arith.constant 0 : index
    %133 = vector.load %arg15[%c0_56, %c0_57] : memref<1x64xf32, #tpu.memory_space<vmem>>, vector<1x64xf32>
    %c0_58 = arith.constant 0 : index
    %c0_59 = arith.constant 0 : index
    %134 = vector.load %arg16[%c0_58, %c0_59] : memref<64x192xbf16, #tpu.memory_space<vmem>>, vector<64x192xbf16>
    %c0_60 = arith.constant 0 : index
    %c0_61 = arith.constant 0 : index
    %135 = vector.load %arg17[%c0_60, %c0_61] : memref<1x192xf32, #tpu.memory_space<vmem>>, vector<1x192xf32>
    %c0_62 = arith.constant 0 : index
    %c0_63 = arith.constant 0 : index
    %136 = vector.load %arg18[%c0_62, %c0_63] : memref<64x64xbf16, #tpu.memory_space<vmem>>, vector<64x64xbf16>
    %c0_64 = arith.constant 0 : index
    %c0_65 = arith.constant 0 : index
    %137 = vector.load %arg19[%c0_64, %c0_65] : memref<1x64xf32, #tpu.memory_space<vmem>>, vector<1x64xf32>
    %c0_66 = arith.constant 0 : index
    %c0_67 = arith.constant 0 : index
    %138 = vector.load %arg20[%c0_66, %c0_67] : memref<1x64xf32, #tpu.memory_space<vmem>>, vector<1x64xf32>
    %c0_68 = arith.constant 0 : index
    %c0_69 = arith.constant 0 : index
    %139 = vector.load %arg21[%c0_68, %c0_69] : memref<1x64xf32, #tpu.memory_space<vmem>>, vector<1x64xf32>
    %c0_70 = arith.constant 0 : index
    %c0_71 = arith.constant 0 : index
    %140 = vector.load %arg22[%c0_70, %c0_71] : memref<64x256xbf16, #tpu.memory_space<vmem>>, vector<64x256xbf16>
    %c0_72 = arith.constant 0 : index
    %c0_73 = arith.constant 0 : index
    %141 = vector.load %arg23[%c0_72, %c0_73] : memref<1x256xf32, #tpu.memory_space<vmem>>, vector<1x256xf32>
    %c0_74 = arith.constant 0 : index
    %c0_75 = arith.constant 0 : index
    %142 = vector.load %arg24[%c0_74, %c0_75] : memref<256x64xbf16, #tpu.memory_space<vmem>>, vector<256x64xbf16>
    %c0_76 = arith.constant 0 : index
    %c0_77 = arith.constant 0 : index
    %143 = vector.load %arg25[%c0_76, %c0_77] : memref<1x64xf32, #tpu.memory_space<vmem>>, vector<1x64xf32>
    %cst_78 = arith.constant dense<0.000000e+00> : vector<5xf32>
    %144 = vector.multi_reduction <add>, %131, %cst_78 [1] : vector<5x64xf32> to vector<5xf32>
    %145 = vector.shape_cast %144 : vector<5xf32> to vector<5x1xf32>
    %cst_79 = arith.constant 6.400000e+01 : f32
    %146 = vector.broadcast %cst_79 : f32 to vector<5x1xf32>
    %147 = arith.divf %145, %146 : vector<5x1xf32>
    %148 = vector.broadcast %147 : vector<5x1xf32> to vector<5x64xf32>
    %149 = arith.subf %131, %148 : vector<5x64xf32>
    %150 = arith.mulf %149, %149 : vector<5x64xf32>
    %cst_80 = arith.constant dense<0.000000e+00> : vector<5xf32>
    %151 = vector.multi_reduction <add>, %150, %cst_80 [1] : vector<5x64xf32> to vector<5xf32>
    %152 = vector.shape_cast %151 : vector<5xf32> to vector<5x1xf32>
    %cst_81 = arith.constant 6.400000e+01 : f32
    %153 = vector.broadcast %cst_81 : f32 to vector<5x1xf32>
    %154 = arith.divf %152, %153 : vector<5x1xf32>
    %cst_82 = arith.constant 9.99999997E-7 : f32
    %155 = vector.broadcast %cst_82 : f32 to vector<5x1xf32>
    %156 = arith.addf %154, %155 : vector<5x1xf32>
    %157 = math.rsqrt %156 : vector<5x1xf32>
    %158 = vector.broadcast %157 : vector<5x1xf32> to vector<5x64xf32>
    %159 = arith.mulf %149, %158 : vector<5x64xf32>
    %160 = vector.broadcast %132 : vector<1x64xf32> to vector<5x64xf32>
    %161 = arith.mulf %159, %160 : vector<5x64xf32>
    %162 = vector.broadcast %133 : vector<1x64xf32> to vector<5x64xf32>
    %163 = arith.addf %161, %162 : vector<5x64xf32>
    %164 = arith.truncf %163 : vector<5x64xf32> to vector<5x64xbf16>
    %cst_83 = arith.constant dense<0.000000e+00> : vector<5x192xf32>
    %165 = tpu.matmul %164, %134, %cst_83 {dimension_numbers = #tpu.dot_dimension_numbers<[1], [0], [0], [1], [0, 0, 1, 1], [], []>} : vector<5x64xbf16>, vector<64x192xbf16>, vector<5x192xf32> -> vector<5x192xf32>
    %166 = vector.broadcast %135 : vector<1x192xf32> to vector<5x192xf32>
    %167 = arith.addf %165, %166 : vector<5x192xf32>
    %168 = vector.extract_strided_slice %167 {offsets = [0, 0], sizes = [5, 32], strides = [1, 1]} : vector<5x192xf32> to vector<5x32xf32>
    %cst_84 = arith.constant 0.176776692 : f32
    %169 = vector.broadcast %cst_84 : f32 to vector<5x32xf32>
    %170 = arith.mulf %168, %169 : vector<5x32xf32>
    %171 = vector.extract_strided_slice %167 {offsets = [0, 64], sizes = [5, 32], strides = [1, 1]} : vector<5x192xf32> to vector<5x32xf32>
    %172 = vector.extract_strided_slice %167 {offsets = [0, 128], sizes = [5, 32], strides = [1, 1]} : vector<5x192xf32> to vector<5x32xf32>
    %173 = arith.truncf %170 : vector<5x32xf32> to vector<5x32xbf16>
    %174 = arith.truncf %171 : vector<5x32xf32> to vector<5x32xbf16>
    "tpu.trace_start"() <{level = 10 : i32, message = "nd,md->nm"}> : () -> ()
    %cst_85 = arith.constant dense<0.000000e+00> : vector<5x5xf32>
    %175 = tpu.matmul %173, %174, %cst_85 {dimension_numbers = #tpu.dot_dimension_numbers<[1], [1], [0], [0], [0, 0, 1, 0], [], []>} : vector<5x32xbf16>, vector<5x32xbf16>, vector<5x5xf32> -> vector<5x5xf32>
    "tpu.trace_stop"() : () -> ()
    %cst_86 = arith.constant dense<0xFF800000> : vector<5xf32>
    %176 = vector.multi_reduction <maximumf>, %175, %cst_86 [1] : vector<5x5xf32> to vector<5xf32>
    %177 = vector.shape_cast %176 : vector<5xf32> to vector<5x1xf32>
    %178 = vector.broadcast %177 : vector<5x1xf32> to vector<5x5xf32>
    %179 = arith.subf %175, %178 : vector<5x5xf32>
    %180 = math.exp %179 : vector<5x5xf32>
    %cst_87 = arith.constant dense<0.000000e+00> : vector<5xf32>
    %181 = vector.multi_reduction <add>, %180, %cst_87 [1] : vector<5x5xf32> to vector<5xf32>
    %182 = vector.shape_cast %181 : vector<5xf32> to vector<5x1xf32>
    %183 = tpu.reciprocal %182 {approx = true} : vector<5x1xf32> -> vector<5x1xf32>
    %184 = vector.broadcast %183 : vector<5x1xf32> to vector<5x5xf32>
    %185 = arith.mulf %180, %184 : vector<5x5xf32>
    %186 = arith.truncf %185 : vector<5x5xf32> to vector<5x5xbf16>
    %187 = arith.truncf %172 : vector<5x32xf32> to vector<5x32xbf16>
    %cst_88 = arith.constant dense<0.000000e+00> : vector<5x32xf32>
    %188 = tpu.matmul %186, %187, %cst_88 {dimension_numbers = #tpu.dot_dimension_numbers<[1], [0], [0], [1], [0, 0, 1, 1], [], []>} : vector<5x5xbf16>, vector<5x32xbf16>, vector<5x32xf32> -> vector<5x32xf32>
    %189 = arith.truncf %188 : vector<5x32xf32> to vector<5x32xbf16>
    %190 = vector.extract_strided_slice %136 {offsets = [0, 0], sizes = [32, 64], strides = [1, 1]} : vector<64x64xbf16> to vector<32x64xbf16>
    %cst_89 = arith.constant dense<0.000000e+00> : vector<5x64xf32>
    %191 = tpu.matmul %189, %190, %cst_89 {dimension_numbers = #tpu.dot_dimension_numbers<[1], [0], [0], [1], [0, 0, 1, 1], [], []>} : vector<5x32xbf16>, vector<32x64xbf16>, vector<5x64xf32> -> vector<5x64xf32>
    %192 = vector.extract_strided_slice %167 {offsets = [0, 32], sizes = [5, 32], strides = [1, 1]} : vector<5x192xf32> to vector<5x32xf32>
    %cst_90 = arith.constant 0.176776692 : f32
    %193 = vector.broadcast %cst_90 : f32 to vector<5x32xf32>
    %194 = arith.mulf %192, %193 : vector<5x32xf32>
    %195 = vector.extract_strided_slice %167 {offsets = [0, 96], sizes = [5, 32], strides = [1, 1]} : vector<5x192xf32> to vector<5x32xf32>
    %196 = vector.extract_strided_slice %167 {offsets = [0, 160], sizes = [5, 32], strides = [1, 1]} : vector<5x192xf32> to vector<5x32xf32>
    %197 = arith.truncf %194 : vector<5x32xf32> to vector<5x32xbf16>
    %198 = arith.truncf %195 : vector<5x32xf32> to vector<5x32xbf16>
    "tpu.trace_start"() <{level = 10 : i32, message = "nd,md->nm"}> : () -> ()
    %cst_91 = arith.constant dense<0.000000e+00> : vector<5x5xf32>
    %199 = tpu.matmul %197, %198, %cst_91 {dimension_numbers = #tpu.dot_dimension_numbers<[1], [1], [0], [0], [0, 0, 1, 0], [], []>} : vector<5x32xbf16>, vector<5x32xbf16>, vector<5x5xf32> -> vector<5x5xf32>
    "tpu.trace_stop"() : () -> ()
    %cst_92 = arith.constant dense<0xFF800000> : vector<5xf32>
    %200 = vector.multi_reduction <maximumf>, %199, %cst_92 [1] : vector<5x5xf32> to vector<5xf32>
    %201 = vector.shape_cast %200 : vector<5xf32> to vector<5x1xf32>
    %202 = vector.broadcast %201 : vector<5x1xf32> to vector<5x5xf32>
    %203 = arith.subf %199, %202 : vector<5x5xf32>
    %204 = math.exp %203 : vector<5x5xf32>
    %cst_93 = arith.constant dense<0.000000e+00> : vector<5xf32>
    %205 = vector.multi_reduction <add>, %204, %cst_93 [1] : vector<5x5xf32> to vector<5xf32>
    %206 = vector.shape_cast %205 : vector<5xf32> to vector<5x1xf32>
    %207 = tpu.reciprocal %206 {approx = true} : vector<5x1xf32> -> vector<5x1xf32>
    %208 = vector.broadcast %207 : vector<5x1xf32> to vector<5x5xf32>
    %209 = arith.mulf %204, %208 : vector<5x5xf32>
    %210 = arith.truncf %209 : vector<5x5xf32> to vector<5x5xbf16>
    %211 = arith.truncf %196 : vector<5x32xf32> to vector<5x32xbf16>
    %cst_94 = arith.constant dense<0.000000e+00> : vector<5x32xf32>
    %212 = tpu.matmul %210, %211, %cst_94 {dimension_numbers = #tpu.dot_dimension_numbers<[1], [0], [0], [1], [0, 0, 1, 1], [], []>} : vector<5x5xbf16>, vector<5x32xbf16>, vector<5x32xf32> -> vector<5x32xf32>
    %213 = arith.truncf %212 : vector<5x32xf32> to vector<5x32xbf16>
    %214 = vector.extract_strided_slice %136 {offsets = [32, 0], sizes = [32, 64], strides = [1, 1]} : vector<64x64xbf16> to vector<32x64xbf16>
    %cst_95 = arith.constant dense<0.000000e+00> : vector<5x64xf32>
    %215 = tpu.matmul %213, %214, %cst_95 {dimension_numbers = #tpu.dot_dimension_numbers<[1], [0], [0], [1], [0, 0, 1, 1], [], []>} : vector<5x32xbf16>, vector<32x64xbf16>, vector<5x64xf32> -> vector<5x64xf32>
    %216 = arith.addf %191, %215 : vector<5x64xf32>
    %217 = arith.addf %131, %216 : vector<5x64xf32>
    %218 = vector.broadcast %137 : vector<1x64xf32> to vector<5x64xf32>
    %219 = arith.addf %217, %218 : vector<5x64xf32>
    %cst_96 = arith.constant dense<0.000000e+00> : vector<5xf32>
    %220 = vector.multi_reduction <add>, %219, %cst_96 [1] : vector<5x64xf32> to vector<5xf32>
    %221 = vector.shape_cast %220 : vector<5xf32> to vector<5x1xf32>
    %cst_97 = arith.constant 6.400000e+01 : f32
    %222 = vector.broadcast %cst_97 : f32 to vector<5x1xf32>
    %223 = arith.divf %221, %222 : vector<5x1xf32>
    %224 = vector.broadcast %223 : vector<5x1xf32> to vector<5x64xf32>
    %225 = arith.subf %219, %224 : vector<5x64xf32>
    %226 = arith.mulf %225, %225 : vector<5x64xf32>
    %cst_98 = arith.constant dense<0.000000e+00> : vector<5xf32>
    %227 = vector.multi_reduction <add>, %226, %cst_98 [1] : vector<5x64xf32> to vector<5xf32>
    %228 = vector.shape_cast %227 : vector<5xf32> to vector<5x1xf32>
    %cst_99 = arith.constant 6.400000e+01 : f32
    %229 = vector.broadcast %cst_99 : f32 to vector<5x1xf32>
    %230 = arith.divf %228, %229 : vector<5x1xf32>
    %cst_100 = arith.constant 9.99999997E-7 : f32
    %231 = vector.broadcast %cst_100 : f32 to vector<5x1xf32>
    %232 = arith.addf %230, %231 : vector<5x1xf32>
    %233 = math.rsqrt %232 : vector<5x1xf32>
    %234 = vector.broadcast %233 : vector<5x1xf32> to vector<5x64xf32>
    %235 = arith.mulf %225, %234 : vector<5x64xf32>
    %236 = vector.broadcast %138 : vector<1x64xf32> to vector<5x64xf32>
    %237 = arith.mulf %235, %236 : vector<5x64xf32>
    %238 = vector.broadcast %139 : vector<1x64xf32> to vector<5x64xf32>
    %239 = arith.addf %237, %238 : vector<5x64xf32>
    %240 = arith.truncf %239 : vector<5x64xf32> to vector<5x64xbf16>
    %cst_101 = arith.constant dense<0.000000e+00> : vector<5x256xf32>
    %241 = tpu.matmul %240, %140, %cst_101 {dimension_numbers = #tpu.dot_dimension_numbers<[1], [0], [0], [1], [0, 0, 1, 1], [], []>} : vector<5x64xbf16>, vector<64x256xbf16>, vector<5x256xf32> -> vector<5x256xf32>
    %242 = vector.broadcast %141 : vector<1x256xf32> to vector<5x256xf32>
    %243 = arith.addf %241, %242 : vector<5x256xf32>
    %cst_102 = arith.constant 5.000000e-01 : f32
    %244 = vector.broadcast %cst_102 : f32 to vector<5x256xf32>
    %245 = arith.mulf %244, %243 : vector<5x256xf32>
    %cst_103 = arith.constant 4.471500e-02 : f32
    %246 = vector.broadcast %cst_103 : f32 to vector<5x256xf32>
    %247 = arith.mulf %246, %243 : vector<5x256xf32>
    %248 = arith.mulf %247, %243 : vector<5x256xf32>
    %249 = arith.mulf %248, %243 : vector<5x256xf32>
    %250 = arith.addf %243, %249 : vector<5x256xf32>
    %cst_104 = arith.constant 0.797884583 : f32
    %251 = vector.broadcast %cst_104 : f32 to vector<5x256xf32>
    %252 = arith.mulf %251, %250 : vector<5x256xf32>
    %253 = math.tanh %252 : vector<5x256xf32>
    %cst_105 = arith.constant 1.000000e+00 : f32
    %254 = vector.broadcast %cst_105 : f32 to vector<5x256xf32>
    %255 = arith.addf %254, %253 : vector<5x256xf32>
    %256 = arith.mulf %245, %255 : vector<5x256xf32>
    %257 = arith.truncf %256 : vector<5x256xf32> to vector<5x256xbf16>
    %cst_106 = arith.constant dense<0.000000e+00> : vector<5x64xf32>
    %258 = tpu.matmul %257, %142, %cst_106 {dimension_numbers = #tpu.dot_dimension_numbers<[1], [0], [0], [1], [0, 0, 1, 1], [], []>} : vector<5x256xbf16>, vector<256x64xbf16>, vector<5x64xf32> -> vector<5x64xf32>
    %259 = vector.broadcast %143 : vector<1x64xf32> to vector<5x64xf32>
    %260 = arith.addf %258, %259 : vector<5x64xf32>
    %261 = arith.addf %219, %260 : vector<5x64xf32>
    %c0_107 = arith.constant 0 : index
    %c0_108 = arith.constant 0 : index
    %c0_109 = arith.constant 0 : index
    %262 = vector.load %arg26[%c0_107, %c0_108, %c0_109] : memref<1x5x64xf32, #tpu.memory_space<vmem>>, vector<1x5x64xf32>
    %263 = vector.shape_cast %262 : vector<1x5x64xf32> to vector<5x64xf32>
    %264 = vector.shape_cast %261 : vector<5x64xf32> to vector<1x5x64xf32>
    tpu.vector_store %arg26[%c0_107, %c0_108, %c0_109], %264 {strides = array<i32>} : memref<1x5x64xf32, #tpu.memory_space<vmem>>, vector<1x5x64xf32>,
    return
  }
  func.func @transform_0(%arg0: i32) -> (i32, i32, i32) {
    %c0_i32 = arith.constant 0 : i32
    %c0_i32_0 = arith.constant 0 : i32
    %c0_i32_1 = arith.constant 0 : i32
    return %arg0, %c0_i32, %c0_i32_0 : i32, i32, i32
  }
  func.func @transform_1(%arg0: i32) -> (i32, i32) {
    %c0_i32 = arith.constant 0 : i32
    %c0_i32_0 = arith.constant 0 : i32
    %c0_i32_1 = arith.constant 0 : i32
    return %c0_i32, %c0_i32_0 : i32, i32
  }
  func.func @transform_2(%arg0: i32) -> (i32, i32) {
    %c0_i32 = arith.constant 0 : i32
    %c0_i32_0 = arith.constant 0 : i32
    %c0_i32_1 = arith.constant 0 : i32
    return %c0_i32, %c0_i32_0 : i32, i32
  }
  func.func @transform_3(%arg0: i32) -> (i32, i32) {
    %c0_i32 = arith.constant 0 : i32
    %c0_i32_0 = arith.constant 0 : i32
    %c0_i32_1 = arith.constant 0 : i32
    return %c0_i32, %c0_i32_0 : i32, i32
  }
  func.func @transform_4(%arg0: i32) -> (i32, i32) {
    %c0_i32 = arith.constant 0 : i32
    %c0_i32_0 = arith.constant 0 : i32
    %c0_i32_1 = arith.constant 0 : i32
    return %c0_i32, %c0_i32_0 : i32, i32
  }
  func.func @transform_5(%arg0: i32) -> (i32, i32) {
    %c0_i32 = arith.constant 0 : i32
    %c0_i32_0 = arith.constant 0 : i32
    %c0_i32_1 = arith.constant 0 : i32
    return %c0_i32, %c0_i32_0 : i32, i32
  }
  func.func @transform_6(%arg0: i32) -> (i32, i32) {
    %c0_i32 = arith.constant 0 : i32
    %c0_i32_0 = arith.constant 0 : i32
    %c0_i32_1 = arith.constant 0 : i32
    return %c0_i32, %c0_i32_0 : i32, i32
  }
  func.func @transform_7(%arg0: i32) -> (i32, i32) {
    %c0_i32 = arith.constant 0 : i32
    %c0_i32_0 = arith.constant 0 : i32
    %c0_i32_1 = arith.constant 0 : i32
    return %c0_i32, %c0_i32_0 : i32, i32
  }
  func.func @transform_8(%arg0: i32) -> (i32, i32) {
    %c0_i32 = arith.constant 0 : i32
    %c0_i32_0 = arith.constant 0 : i32
    %c0_i32_1 = arith.constant 0 : i32
    return %c0_i32, %c0_i32_0 : i32, i32
  }
  func.func @transform_9(%arg0: i32) -> (i32, i32) {
    %c0_i32 = arith.constant 0 : i32
    %c0_i32_0 = arith.constant 0 : i32
    %c0_i32_1 = arith.constant 0 : i32
    return %c0_i32, %c0_i32_0 : i32, i32
  }
  func.func @transform_10(%arg0: i32) -> (i32, i32) {
    %c0_i32 = arith.constant 0 : i32
    %c0_i32_0 = arith.constant 0 : i32
    %c0_i32_1 = arith.constant 0 : i32
    return %c0_i32, %c0_i32_0 : i32, i32
  }
  func.func @transform_11(%arg0: i32) -> (i32, i32) {
    %c0_i32 = arith.constant 0 : i32
    %c0_i32_0 = arith.constant 0 : i32
    %c0_i32_1 = arith.constant 0 : i32
    return %c0_i32, %c0_i32_0 : i32, i32
  }
  func.func @transform_12(%arg0: i32) -> (i32, i32) {
    %c0_i32 = arith.constant 0 : i32
    %c0_i32_0 = arith.constant 0 : i32
    %c0_i32_1 = arith.constant 0 : i32
    return %c0_i32, %c0_i32_0 : i32, i32
  }
  func.func @transform_13(%arg0: i32) -> (i32, i32) {
    %c0_i32 = arith.constant 0 : i32
    %c0_i32_0 = arith.constant 0 : i32
    %c0_i32_1 = arith.constant 0 : i32
    return %c0_i32, %c0_i32_0 : i32, i32
  }
  func.func @transform_14(%arg0: i32) -> (i32, i32) {
    %c0_i32 = arith.constant 0 : i32
    %c0_i32_0 = arith.constant 0 : i32
    %c0_i32_1 = arith.constant 0 : i32
    return %c0_i32, %c0_i32_0 : i32, i32
  }
  func.func @transform_15(%arg0: i32) -> (i32, i32) {
    %c0_i32 = arith.constant 0 : i32
    %c0_i32_0 = arith.constant 0 : i32
    %c0_i32_1 = arith.constant 0 : i32
    return %c0_i32, %c0_i32_0 : i32, i32
  }
  func.func @transform_16(%arg0: i32) -> (i32, i32) {
    %c0_i32 = arith.constant 0 : i32
    %c0_i32_0 = arith.constant 0 : i32
    %c0_i32_1 = arith.constant 0 : i32
    return %c0_i32, %c0_i32_0 : i32, i32
  }
  func.func @transform_17(%arg0: i32) -> (i32, i32) {
    %c0_i32 = arith.constant 0 : i32
    %c0_i32_0 = arith.constant 0 : i32
    %c0_i32_1 = arith.constant 0 : i32
    return %c0_i32, %c0_i32_0 : i32, i32
  }
  func.func @transform_18(%arg0: i32) -> (i32, i32) {
    %c0_i32 = arith.constant 0 : i32
    %c0_i32_0 = arith.constant 0 : i32
    %c0_i32_1 = arith.constant 0 : i32
    return %c0_i32, %c0_i32_0 : i32, i32
  }
  func.func @transform_19(%arg0: i32) -> (i32, i32) {
    %c0_i32 = arith.constant 0 : i32
    %c0_i32_0 = arith.constant 0 : i32
    %c0_i32_1 = arith.constant 0 : i32
    return %c0_i32, %c0_i32_0 : i32, i32
  }
  func.func @transform_20(%arg0: i32) -> (i32, i32) {
    %c0_i32 = arith.constant 0 : i32
    %c0_i32_0 = arith.constant 0 : i32
    %c0_i32_1 = arith.constant 0 : i32
    return %c0_i32, %c0_i32_0 : i32, i32
  }
  func.func @transform_21(%arg0: i32) -> (i32, i32) {
    %c0_i32 = arith.constant 0 : i32
    %c0_i32_0 = arith.constant 0 : i32
    %c0_i32_1 = arith.constant 0 : i32
    return %c0_i32, %c0_i32_0 : i32, i32
  }
  func.func @transform_22(%arg0: i32) -> (i32, i32) {
    %c0_i32 = arith.constant 0 : i32
    %c0_i32_0 = arith.constant 0 : i32
    %c0_i32_1 = arith.constant 0 : i32
    return %c0_i32, %c0_i32_0 : i32, i32
  }
  func.func @transform_23(%arg0: i32) -> (i32, i32) {
    %c0_i32 = arith.constant 0 : i32
    %c0_i32_0 = arith.constant 0 : i32
    %c0_i32_1 = arith.constant 0 : i32
    return %c0_i32, %c0_i32_0 : i32, i32
  }
  func.func @transform_24(%arg0: i32) -> (i32, i32) {
    %c0_i32 = arith.constant 0 : i32
    %c0_i32_0 = arith.constant 0 : i32
    %c0_i32_1 = arith.constant 0 : i32
    return %c0_i32, %c0_i32_0 : i32, i32
  }
  func.func @transform_25(%arg0: i32) -> (i32, i32, i32) {
    %c0_i32 = arith.constant 0 : i32
    %c0_i32_0 = arith.constant 0 : i32
    %c0_i32_1 = arith.constant 0 : i32
    return %arg0, %c0_i32, %c0_i32_0 : i32, i32, i32
  }
}

module attributes {stable_mosaic.version = 11 : i64} {
  func.func @_head_kernel(%arg0: i32, %arg1: memref<2x64xf32, #tpu.memory_space<vmem>>, %arg2: memref<1x64xf32, #tpu.memory_space<vmem>>, %arg3: memref<1x64xf32, #tpu.memory_space<vmem>>, %arg4: memref<64x16xbf16, #tpu.memory_space<vmem>>, %arg5: memref<1x16xf32, #tpu.memory_space<vmem>>, %arg6: memref<16x8xbf16, #tpu.memory_space<vmem>>, %arg7: memref<1x8xf32, #tpu.memory_space<vmem>>, %arg8: memref<2x8xf32, #tpu.memory_space<vmem>>) attributes {dimension_semantics = [#tpu.dimension_semantics<arbitrary>], iteration_bounds = array<i64: 1>, scalar_prefetch = 0 : i64, scratch_operands = 0 : i64, tpu.core_type = #tpu.core_type<tc>, window_params = [{pipeline_mode = #tpu.pipeline_mode<synchronous>, transform_indices = @transform_0, window_bounds = array<i64: 2, 64>}, {pipeline_mode = #tpu.pipeline_mode<synchronous>, transform_indices = @transform_1, window_bounds = array<i64: 1, 64>}, {pipeline_mode = #tpu.pipeline_mode<synchronous>, transform_indices = @transform_2, window_bounds = array<i64: 1, 64>}, {pipeline_mode = #tpu.pipeline_mode<synchronous>, transform_indices = @transform_3, window_bounds = array<i64: 64, 16>}, {pipeline_mode = #tpu.pipeline_mode<synchronous>, transform_indices = @transform_4, window_bounds = array<i64: 1, 16>}, {pipeline_mode = #tpu.pipeline_mode<synchronous>, transform_indices = @transform_5, window_bounds = array<i64: 16, 8>}, {pipeline_mode = #tpu.pipeline_mode<synchronous>, transform_indices = @transform_6, window_bounds = array<i64: 1, 8>}, {pipeline_mode = #tpu.pipeline_mode<synchronous>, transform_indices = @transform_7, window_bounds = array<i64: 2, 8>}]} {
    %c0 = arith.constant 0 : index
    %c0_0 = arith.constant 0 : index
    %0 = vector.load %arg1[%c0, %c0_0] : memref<2x64xf32, #tpu.memory_space<vmem>>, vector<2x64xf32>
    %c0_1 = arith.constant 0 : index
    %c0_2 = arith.constant 0 : index
    %1 = vector.load %arg2[%c0_1, %c0_2] : memref<1x64xf32, #tpu.memory_space<vmem>>, vector<1x64xf32>
    %c0_3 = arith.constant 0 : index
    %c0_4 = arith.constant 0 : index
    %2 = vector.load %arg3[%c0_3, %c0_4] : memref<1x64xf32, #tpu.memory_space<vmem>>, vector<1x64xf32>
    %cst = arith.constant dense<0.000000e+00> : vector<2xf32>
    %3 = vector.multi_reduction <add>, %0, %cst [1] : vector<2x64xf32> to vector<2xf32>
    %4 = vector.shape_cast %3 : vector<2xf32> to vector<2x1xf32>
    %cst_5 = arith.constant 6.400000e+01 : f32
    %5 = vector.broadcast %cst_5 : f32 to vector<2x1xf32>
    %6 = arith.divf %4, %5 : vector<2x1xf32>
    %7 = vector.broadcast %6 : vector<2x1xf32> to vector<2x64xf32>
    %8 = arith.subf %0, %7 : vector<2x64xf32>
    %9 = arith.mulf %8, %8 : vector<2x64xf32>
    %cst_6 = arith.constant dense<0.000000e+00> : vector<2xf32>
    %10 = vector.multi_reduction <add>, %9, %cst_6 [1] : vector<2x64xf32> to vector<2xf32>
    %11 = vector.shape_cast %10 : vector<2xf32> to vector<2x1xf32>
    %cst_7 = arith.constant 6.400000e+01 : f32
    %12 = vector.broadcast %cst_7 : f32 to vector<2x1xf32>
    %13 = arith.divf %11, %12 : vector<2x1xf32>
    %cst_8 = arith.constant 9.99999997E-7 : f32
    %14 = vector.broadcast %cst_8 : f32 to vector<2x1xf32>
    %15 = arith.addf %13, %14 : vector<2x1xf32>
    %16 = math.rsqrt %15 : vector<2x1xf32>
    %17 = vector.broadcast %16 : vector<2x1xf32> to vector<2x64xf32>
    %18 = arith.mulf %8, %17 : vector<2x64xf32>
    %19 = vector.broadcast %1 : vector<1x64xf32> to vector<2x64xf32>
    %20 = arith.mulf %18, %19 : vector<2x64xf32>
    %21 = vector.broadcast %2 : vector<1x64xf32> to vector<2x64xf32>
    %22 = arith.addf %20, %21 : vector<2x64xf32>
    %23 = arith.truncf %22 : vector<2x64xf32> to vector<2x64xbf16>
    %c0_9 = arith.constant 0 : index
    %c0_10 = arith.constant 0 : index
    %24 = vector.load %arg4[%c0_9, %c0_10] : memref<64x16xbf16, #tpu.memory_space<vmem>>, vector<64x16xbf16>
    %cst_11 = arith.constant dense<0.000000e+00> : vector<2x16xf32>
    %25 = tpu.matmul %23, %24, %cst_11 {dimension_numbers = #tpu.dot_dimension_numbers<[1], [0], [0], [1], [0, 0, 1, 1], [], []>} : vector<2x64xbf16>, vector<64x16xbf16>, vector<2x16xf32> -> vector<2x16xf32>
    %c0_12 = arith.constant 0 : index
    %c0_13 = arith.constant 0 : index
    %26 = vector.load %arg5[%c0_12, %c0_13] : memref<1x16xf32, #tpu.memory_space<vmem>>, vector<1x16xf32>
    %27 = vector.broadcast %26 : vector<1x16xf32> to vector<2x16xf32>
    %28 = arith.addf %25, %27 : vector<2x16xf32>
    %29 = arith.truncf %28 : vector<2x16xf32> to vector<2x16xbf16>
    %c0_14 = arith.constant 0 : index
    %c0_15 = arith.constant 0 : index
    %30 = vector.load %arg6[%c0_14, %c0_15] : memref<16x8xbf16, #tpu.memory_space<vmem>>, vector<16x8xbf16>
    %cst_16 = arith.constant dense<0.000000e+00> : vector<2x8xf32>
    %31 = tpu.matmul %29, %30, %cst_16 {dimension_numbers = #tpu.dot_dimension_numbers<[1], [0], [0], [1], [0, 0, 1, 1], [], []>} : vector<2x16xbf16>, vector<16x8xbf16>, vector<2x8xf32> -> vector<2x8xf32>
    %c0_17 = arith.constant 0 : index
    %c0_18 = arith.constant 0 : index
    %32 = vector.load %arg7[%c0_17, %c0_18] : memref<1x8xf32, #tpu.memory_space<vmem>>, vector<1x8xf32>
    %33 = vector.broadcast %32 : vector<1x8xf32> to vector<2x8xf32>
    %34 = arith.addf %31, %33 : vector<2x8xf32>
    %35 = arith.negf %34 : vector<2x8xf32>
    %36 = math.exp %35 : vector<2x8xf32>
    %cst_19 = arith.constant 1.000000e+00 : f32
    %37 = vector.broadcast %cst_19 : f32 to vector<2x8xf32>
    %38 = arith.addf %37, %36 : vector<2x8xf32>
    %39 = arith.divf %37, %38 : vector<2x8xf32>
    %c0_20 = arith.constant 0 : index
    %c0_21 = arith.constant 0 : index
    %40 = vector.load %arg8[%c0_20, %c0_21] : memref<2x8xf32, #tpu.memory_space<vmem>>, vector<2x8xf32>
    tpu.vector_store %arg8[%c0_20, %c0_21], %39 {strides = array<i32>} : memref<2x8xf32, #tpu.memory_space<vmem>>, vector<2x8xf32>,
    return
  }
  func.func @transform_0(%arg0: i32) -> (i32, i32) {
    %c0_i32 = arith.constant 0 : i32
    %c0_i32_0 = arith.constant 0 : i32
    %c0_i32_1 = arith.constant 0 : i32
    return %c0_i32, %c0_i32_0 : i32, i32
  }
  func.func @transform_1(%arg0: i32) -> (i32, i32) {
    %c0_i32 = arith.constant 0 : i32
    %c0_i32_0 = arith.constant 0 : i32
    %c0_i32_1 = arith.constant 0 : i32
    return %c0_i32, %c0_i32_0 : i32, i32
  }
  func.func @transform_2(%arg0: i32) -> (i32, i32) {
    %c0_i32 = arith.constant 0 : i32
    %c0_i32_0 = arith.constant 0 : i32
    %c0_i32_1 = arith.constant 0 : i32
    return %c0_i32, %c0_i32_0 : i32, i32
  }
  func.func @transform_3(%arg0: i32) -> (i32, i32) {
    %c0_i32 = arith.constant 0 : i32
    %c0_i32_0 = arith.constant 0 : i32
    %c0_i32_1 = arith.constant 0 : i32
    return %c0_i32, %c0_i32_0 : i32, i32
  }
  func.func @transform_4(%arg0: i32) -> (i32, i32) {
    %c0_i32 = arith.constant 0 : i32
    %c0_i32_0 = arith.constant 0 : i32
    %c0_i32_1 = arith.constant 0 : i32
    return %c0_i32, %c0_i32_0 : i32, i32
  }
  func.func @transform_5(%arg0: i32) -> (i32, i32) {
    %c0_i32 = arith.constant 0 : i32
    %c0_i32_0 = arith.constant 0 : i32
    %c0_i32_1 = arith.constant 0 : i32
    return %c0_i32, %c0_i32_0 : i32, i32
  }
  func.func @transform_6(%arg0: i32) -> (i32, i32) {
    %c0_i32 = arith.constant 0 : i32
    %c0_i32_0 = arith.constant 0 : i32
    %c0_i32_1 = arith.constant 0 : i32
    return %c0_i32, %c0_i32_0 : i32, i32
  }
  func.func @transform_7(%arg0: i32) -> (i32, i32) {
    %c0_i32 = arith.constant 0 : i32
    %c0_i32_0 = arith.constant 0 : i32
    %c0_i32_1 = arith.constant 0 : i32
    return %c0_i32, %c0_i32_0 : i32, i32
  }
}

</mosaic_0001>

<bundles_post_ra>
// kernel: deit_forward.3
= control target key start
LH: loop header
LB: loop body
LE: loop exit
PB: predicated region body
PF: predicated region fallthrough
CT: control target
= control target key end

     0   :  { %vm538_vm0 = vcmask 523264   ;;  %s895_s1 = inlined_call_operand.vmem [shape: bf16[768,64], index: 1, kind: input, shape index: {}]   ;;  %s896_s0 = inlined_call_operand.vmem [shape: f32[8,768], index: 0, kind: input, shape index: {}]   ;;  %s897_s2 = inlined_call_operand.vmem [shape: f32[1,64], index: 2, kind: input, shape index: {}]   ;;  %s898_s3 = inlined_call_operand.vmem [shape: f32[8,64], index: 3, kind: output, shape index: {}]  }
   0x1   :  { %v659_v0 = vld [vmem:[%s895_s1 + $0x40] sm:$0xff]   ;;  %v663_v4 = vld [vmem:[%s895_s1 + $0x48] sm:$0xff]   ;;  %v667_v8 = vld [vmem:[%s895_s1 + $0x50] sm:$0xff]  }
   0x2   :  { %v660_v1 = vld [vmem:[%s895_s1] sm:$0xff]   ;;  %593 = vmatprep.subr.bf16.mxu0 %v659_v0  ;;  %v664_v5 = vld [vmem:[%s895_s1 + $0x8] sm:$0xff]   ;;  %v668_v9 = vld [vmem:[%s895_s1 + $0x10] sm:$0xff]  }
   0x3   :  { %v661_v2 = vld [vmem:[%s895_s1 + $0xc0] sm:$0xff]   ;;  %594 = vmatpush3.bf16.msra.mxu0 %v660_v1  ;;  %v665_v6 = vld [vmem:[%s895_s1 + $0xc8] sm:$0xff]   ;;  %v669_v10 = vld [vmem:[%s895_s1 + $0xd0] sm:$0xff]  }
   0x4   :  { %v662_v3 = vld [vmem:[%s895_s1 + $0x80] sm:$0xff]   ;;  %615 = vmatprep.subr.bf16.mxu1 %v661_v2  ;;  %595 = vmatprep.subr.bf16.mxu0 %v663_v4  ;;  %v666_v7 = vld [vmem:[%s895_s1 + $0x88] sm:$0xff]   ;;  %v670_v11 = vld [vmem:[%s895_s1 + $0x90] sm:$0xff]  }
   0x5   :  { %616 = vmatpush3.bf16.msra.mxu1 %v662_v3  ;;  %v671_v12 = vld [vmem:[%s895_s1 + $0x58] sm:$0xff]   ;;  %v675_v16 = vld [vmem:[%s895_s1 + $0x60] sm:$0xff]   ;;  %v679_v20 = vld [vmem:[%s895_s1 + $0x68] sm:$0xff]  }
   0x6   :  { %617 = vmatprep.subr.bf16.mxu1 %v665_v6  ;;  %v672_v13 = vld [vmem:[%s895_s1 + $0x18] sm:$0xff]   ;;  %v676_v17 = vld [vmem:[%s895_s1 + $0x20] sm:$0xff]   ;;  %v680_v21 = vld [vmem:[%s895_s1 + $0x28] sm:$0xff]  }
   0x7   :  { %596 = vmatpush3.bf16.msra.mxu0 %v664_v5  ;;  %v673_v14 = vld [vmem:[%s895_s1 + $0xd8] sm:$0xff]   ;;  %v677_v18 = vld [vmem:[%s895_s1 + $0xe0] sm:$0xff]   ;;  %v681_v22 = vld [vmem:[%s895_s1 + $0xe8] sm:$0xff]  }
   0x8   :  { %597 = vmatprep.subr.bf16.mxu0 %v667_v8  ;;  %v674_v15 = vld [vmem:[%s895_s1 + $0x98] sm:$0xff]   ;;  %v678_v19 = vld [vmem:[%s895_s1 + $0xa0] sm:$0xff]   ;;  %v682_v23 = vld [vmem:[%s895_s1 + $0xa8] sm:$0xff]  }
   0x9   :  { %618 = vmatpush3.bf16.msra.mxu1 %v666_v7  ;;  %v683_v24 = vld [vmem:[%s895_s1 + $0x70] sm:$0xff]   ;;  %v687_v28 = vld [vmem:[%s895_s1 + $0x78] sm:$0xff]   ;;  %v16_v31 = vld [vmem:[%s896_s0 + $0x8] sm:$0xff] }
   0xa   :  { %619 = vmatprep.subr.bf16.mxu1 %v669_v10  ;;  %v684_v25 = vld [vmem:[%s895_s1 + $0x30] sm:$0xff]   ;;  %v688_v29 = vld [vmem:[%s895_s1 + $0x38] sm:$0xff]   ;;  %v22_v32 = vpack.c.bf16 %v16_v31, %v16_v31  ;;  %v15_v34 = vld [vmem:[%s896_s0] sm:$0xff] }
   0xb   :  { %598 = vmatpush3.bf16.msra.mxu0 %v668_v9  ;;  %v685_v26 = vld [vmem:[%s895_s1 + $0xf0] sm:$0xff]   ;;  %v689_v30 = vld [vmem:[%s895_s1 + $0xf8] sm:$0xff]   ;;  %v21_v35 = vpack.c.bf16 %v15_v34, %v15_v34  ;;  %v691_v36 = vld [vmem:[%s895_s1 + $0x140] sm:$0xff]  }
   0xc   :  { %599 = vmatprep.subr.bf16.mxu0 %v671_v12  ;;  %v686_v27 = vld [vmem:[%s895_s1 + $0xb0] sm:$0xff]   ;;  %v690_v33 = vld [vmem:[%s895_s1 + $0xb8] sm:$0xff]   ;;  %450 = vmatprep.mubr.bf16.mxu0 %v22_v32  ;;  %v692_v39 = vld [vmem:[%s895_s1 + $0x100] sm:$0xff]  }
   0xd   :  { %620 = vmatpush3.bf16.msra.mxu1 %v670_v11  ;;  %v18_v37 = vld [vmem:[%s896_s0 + $0x18] sm:$0xff]  ;;  %v17_v40 = vld [vmem:[%s896_s0 + $0x10] sm:$0xff]  ;;  %v693_v42 = vld [vmem:[%s895_s1 + $0x148] sm:$0xff]  }
   0xe   :  { %621 = vmatprep.subr.bf16.mxu1 %v673_v14  ;;  %v24_v38 = vpack.c.bf16 %v18_v37, %v18_v37  ;;  %v23_v41 = vpack.c.bf16 %v17_v40, %v17_v40  ;;  %v694_v43 = vld [vmem:[%s895_s1 + $0x108] sm:$0xff]   ;;  %v695_v44 = vld [vmem:[%s895_s1 + $0x150] sm:$0xff]   ;;  %v697_v46 = vld [vmem:[%s895_s1 + $0x158] sm:$0xff]  }
   0xf   :  { %600 = vmatpush3.bf16.msra.mxu0 %v672_v13  ;;  %v696_v45 = vld [vmem:[%s895_s1 + $0x110] sm:$0xff]   ;;  %v698_v47 = vld [vmem:[%s895_s1 + $0x118] sm:$0xff]   ;;  %v699_v48 = vld [vmem:[%s895_s1 + $0x160] sm:$0xff]  }
  0x10   :  { %601 = vmatprep.subr.bf16.mxu0 %v675_v16  ;;  %490 = vmatprep.mubr.bf16.mxu1 %v24_v38  ;;  %v700_v49 = vld [vmem:[%s895_s1 + $0x120] sm:$0xff]   ;;  %v701_v50 = vld [vmem:[%s895_s1 + $0x168] sm:$0xff]   ;;  %v703_v54 = vld [vmem:[%s895_s1 + $0x170] sm:$0xff]  }
  0x11   :  { %622 = vmatpush3.bf16.msra.mxu1 %v674_v15  ;;  %v20_v51 = vld [vmem:[%s896_s0 + $0x28] sm:$0xff]  ;;  %v704_v55 = vld [vmem:[%s895_s1 + $0x130] sm:$0xff]   ;;  %v705_v56 = vld [vmem:[%s895_s1 + $0x178] sm:$0xff]  }
  0x12   :  { %623 = vmatprep.subr.bf16.mxu1 %v677_v18  ;;  %v26_v52 = vpack.c.bf16 %v20_v51, %v20_v51  ;;  %v702_v53 = vld [vmem:[%s895_s1 + $0x128] sm:$0xff]   ;;  %v706_v57 = vld [vmem:[%s895_s1 + $0x138] sm:$0xff]   ;;  %v19_v58 = vld [vmem:[%s896_s0 + $0x20] sm:$0xff] }
  0x13   :  { %602 = vmatpush3.bf16.msra.mxu0 %v676_v17  ;;  %v25_v59 = vpack.c.bf16 %v19_v58, %v19_v58  ;;  %v544_v61 = vld [vmem:[%s897_s2] ss:$0 sm:$0xff] }
  0x14   :  { %603 = vmatprep.subr.bf16.mxu0 %v679_v20 }
  0x15   :  { %624 = vmatpush3.bf16.msra.mxu1 %v678_v19 }
  0x16   :  { %625 = vmatprep.subr.bf16.mxu1 %v681_v22 }
  0x17   :  { %604 = vmatpush3.bf16.msra.mxu0 %v680_v21 }
  0x18   :  { %605 = vmatprep.subr.bf16.mxu0 %v683_v24 }
  0x19   :  { %626 = vmatpush3.bf16.msra.mxu1 %v682_v23 }
  0x1a   :  { %627 = vmatprep.subr.bf16.mxu1 %v685_v26 }
  0x1b   :  { %606 = vmatpush3.bf16.msra.mxu0 %v684_v25 }
  0x1c   :  { %607 = vmatprep.subr.bf16.mxu0 %v687_v28 }
  0x1d   :  { %628 = vmatpush3.bf16.msra.mxu1 %v686_v27 }
  0x1e   :  { %629 = vmatprep.subr.bf16.mxu1 %v689_v30 }
  0x1f   :  { %608 = vmatpush3.bf16.msra.mxu0 %v688_v29 }
  0x20   :  { %637 = vmatprep.subr.bf16.mxu0 %v691_v36 }
  0x21   :  { %630 = vmatpush3.bf16.msra.mxu1 %v690_v33 }
  0x22   :  { %451 = vmatmul.mubr.bf16.vlgmr.msra.gmra.mrb[0].mxu0 %v21_v35 }
  0x23   :  { %638 = vmatpush3.bf16.msra.mxu0 %v692_v39  ;;  %530 = vmatprep.mubr.bf16.mxu0 %v26_v52 }
  0x24   :  { %491 = vmatmul.mubr.bf16.vlgmr.msra.gmra.mrb[0].mxu1 %v23_v41  ;;  %639 = vmatprep.subr.bf16.mxu0 %v693_v42 }
  0x27   :  { %640 = vmatpush3.bf16.msra.mxu0 %v694_v43 }
  0x28   :  { %641 = vmatprep.subr.bf16.mxu0 %v695_v44 }
  0x2b   :  { %642 = vmatpush3.bf16.msra.mxu0 %v696_v45 }
  0x2c   :  { %643 = vmatprep.subr.bf16.mxu0 %v697_v46 }
  0x2f   :  { %644 = vmatpush3.bf16.msra.mxu0 %v698_v47 }
  0x30   :  { %645 = vmatprep.subr.bf16.mxu0 %v699_v48 }
  0x33   :  { %646 = vmatpush3.bf16.msra.mxu0 %v700_v49 }
  0x34   :  { %647 = vmatprep.subr.bf16.mxu0 %v701_v50 }
  0x37   :  { %648 = vmatpush3.bf16.msra.mxu0 %v702_v53 }
  0x38   :  { %649 = vmatprep.subr.bf16.mxu0 %v703_v54 }
  0x3b   :  { %650 = vmatpush3.bf16.msra.mxu0 %v704_v55 }
  0x3c   :  { %651 = vmatprep.subr.bf16.mxu0 %v705_v56 }
  0x3f   :  { %652 = vmatpush3.bf16.msra.mxu0 %v706_v57 }
  0x42   :  { %531 = vmatmul.mubr.bf16.vlgmr.msra.gmra.mrb[4].mxu0 %v25_v59 }
  0xf5   :  { %v609_v60 = vpop.f32.mrb[0].mxu0 }
  0xf6   :  { %v610_v62 = vpop.f32.mrb[1].mxu0 }
  0xf7   :  { %v611_v63 = vadd.f32 %v610_v62, %v609_v60  ;;  %v612_v0 = vpop.f32.mrb[2].mxu0  ;;  %v631_v1 = vpop.f32.mrb[0].mxu1 }
  0xf8   :  { %v613_v2 = vpop.f32.mrb[3].mxu0  ;;  %v632_v4 = vpop.f32.mrb[1].mxu1 }
  0xf9   :  { %v453_v3 = vadd.f32 %v611_v63, %v544_v61  ;;  %v633_v5 = vadd.f32 %v632_v4, %v631_v1  ;;  %v634_v6 = vpop.f32.mrb[2].mxu1 }
  0xfa   :  { %v635_v7 = vpop.f32.mrb[3].mxu1 }
  0xfb   :  { %v493_v8 = vadd.f32 %v633_v5, %v453_v3 }
 0x115   :  { %v653_v9 = vpop.f32.mrb[4].mxu0 }
 0x116   :  { %v654_v10 = vpop.f32.mrb[5].mxu0 }
 0x117   :  { %v655_v11 = vadd.f32 %v654_v10, %v653_v9  ;;  %v656_v12 = vpop.f32.mrb[6].mxu0 }
 0x118   :  { %v657_v13 = vpop.f32.mrb[7].mxu0 }
 0x119   :  { %v533_v14 = vadd.f32 %v655_v11, %v493_v8 }
 0x11b   :  { %539 = vst.msk [vmem:[%s898_s3] sm:$0xff] %vm538_vm0, %v533_v14 }

// kernel: deit_forward.5
= control target key start
LH: loop header
LB: loop body
LE: loop exit
PB: predicated region body
PF: predicated region fallthrough
CT: control target
= control target key end

     0   :  { %vm31_vm0 = vcmask 517120   ;;  %s386_s0 = inlined_call_operand.vmem [shape: f32[2,64], index: 0, kind: input, shape index: {}]   ;;  %s387_s1 = inlined_call_operand.vmem [shape: f32[1,64], index: 1, kind: input, shape index: {}]   ;;  %s388_s2 = inlined_call_operand.vmem [shape: f32[1,64], index: 2, kind: input, shape index: {}]   ;;  %s389_s3 = inlined_call_operand.vmem [shape: bf16[64,16], index: 3, kind: input, shape index: {}]   ;;  %s390_s4 = inlined_call_operand.vmem [shape: f32[1,16], index: 4, kind: input, shape index: {}]   ;;  %s391_s5 = inlined_call_operand.vmem [shape: bf16[16,8], index: 5, kind: input, shape index: {}]   ;;  %s392_s6 = inlined_call_operand.vmem [shape: f32[1,8], index: 6, kind: input, shape index: {}]   ;;  %s393_s7 = inlined_call_operand.hbm [shape: f32[2,8], index: 7, kind: output, shape index: {}]  }
   0x1   :  { %v28_v0 = vld [vmem:[%s386_s0] sm:$0x3] }
   0x2   :  { %v32_v1 = vsel %vm31_vm0, %v28_v0, 0.0 }
   0x3   :  { %33 = vadd.xlane.f32.xlu0 %v32_v1 }
   0x4   :  { %12 = vsyncpa [#allocation3], 0  ;;  %v266_v7 = vld [vmem:[%s389_s3] sm:$0xff]   ;;  %v301_v8 = vmov 0.0   ;;  %v267_v9 = vld [vmem:[%s389_s3 + $0x8] sm:$0xff]   ;;  %vm302_vm1 = vmmov 0  }
   0x5   :  { %245 = vmatprep.subr.bf16.mxu0 %v301_v8  ;;  %257 = vmatprep.subr.bf16.mxu1 %v301_v8  ;;  %v268_v10 = vld [vmem:[%s389_s3 + $0x10] sm:$0xff]   ;;  %v269_v11 = vld [vmem:[%s389_s3 + $0x18] sm:$0xff]   ;;  %v226_v16 = vld [vmem:[%s387_s1] ss:$0 sm:$0xff]  ;;  %vm100_vm2 = vcmask 523264   ;;  %vm160_vm3 = vcmask 130048  }
   0x6   :  { %246 = vmatpush3.bf16.msra.mxu0 %v266_v7  ;;  %253 = vmatprep.mubr.msk.bf16.mxu0 %vm302_vm1, %v301_v8  ;;  %v227_v18 = vld [vmem:[%s388_s2] ss:$0 sm:$0xff]  ;;  %vm210_vm4 = vcmask 58368  }
   0x7   :  { %247 = vmatprep.subr.bf16.mxu0 %v301_v8  ;;  %259 = vmatprep.mubr.msk.bf16.mxu1 %vm302_vm1, %v301_v8  ;;  %v270_v22 = vld [vmem:[%s391_s5] sm:$0xff]  }
   0x8   :  { %258 = vmatpush3.bf16.msra.mxu1 %v270_v22  ;;  %v228_v23 = vld [vmem:[%s390_s4] ss:$0 sm:$0xff]  ;;  %s303_s4 = smov [#allocation2]  }
   0x9   :  { %v234_v30 = vld [vmem:[%s392_s6] ss:$0 sm:$0xff]  ;;  %s218_s5 = sshll.u32 %s303_s4, 4  ;;  %s219_s5 = int_to_ptr.vmem [resolvable:$true] %s218_s5 }
   0xa   :  { %248 = vmatpush3.bf16.msra.mxu0 %v267_v9  ;;  %s277_s17 = scalar_lea.vmem %s219_s5, 32  ;;  %p282_p1 = scmp.lt.s32.totalorder %s219_s5, %s219_s5 }
   0xb   :  { %249 = vmatprep.subr.bf16.mxu0 %v301_v8  ;;  %p278_p0 = scmp.ne.s32.totalorder %s219_s5, %s277_s17  ;;  %p283_p2 = scmp.lt.s32.totalorder %s277_s17, %s277_s17 }
   0xd   :  { %p284_p3 = por %p283_p2, %p282_p1 }
   0xe   :  { %250 = vmatpush3.bf16.msra.mxu0 %v268_v10 }
   0xf   :  { %251 = vmatprep.subr.bf16.mxu0 %v301_v8  ;;  %p285_p4 = pnand %p284_p3, %p278_p0 }
  0x12   :  { %252 = vmatpush3.bf16.msra.mxu0 %v269_v11 }
  0x90   :  { %v34_v2 = vpop.xlane.xlu0 %33 }
  0x91   :  { %v36_v3 = vmul.f32 0.015625, %v34_v2 }
  0x93   :  { %v37_v4 = vsub.f32 %v28_v0, %v36_v3 }
  0x95   :  { %v38_v5 = vmul.f32 %v37_v4, %v37_v4 }
  0x97   :  { %v39_v6 = vsel %vm31_vm0, %v38_v5, 0.0 }
  0x98   :  { %40 = vadd.xlane.f32.xlu0 %v39_v6 }
 0x125   :  { %v41_v12 = vpop.xlane.xlu0 %40 }
 0x126   :  { %v42_v13 = vmul.f32 0.015625, %v41_v12 }
 0x128   :  { %v43_v14 = vadd.f32 1e-06, %v42_v13 }
 0x12a   :  { %271 = vrsqrt.f32 %v43_v14 }
 0x134   :  { %v272_v15 = vpop.eup %271 }
 0x135   :  { %v45_v17 = vmul.f32 %v272_v15, %v37_v4 }
 0x137   :  { %v52_v19 = vmul.f32 %v226_v16, %v45_v17 }
 0x139   :  { %v59_v20 = vadd.f32 %v227_v18, %v52_v19 }
 0x13b   :  { %v60_v21 = vpack.c.bf16 %v59_v20, %v59_v20 }
 0x13d   :  { %254 = vmatmul.mubr.msk.bf16.vlgmr.msra.gmra.mrb[0].mxu0 %vm100_vm2, %v60_v21 }
 0x210   :  { %v138_v24 = vpop.f32.mrb[0].mxu0 }
 0x211   :  { %v139_v25 = vadd.f32 %v228_v23, %v138_v24  ;;  %v255_v26 = vpop.f32.mrb[1].mxu0 }
 0x212   :  { %v141_v27 = vpop.f32.mrb[2].mxu0 }
 0x213   :  { %v144_v28 = vpack.c.bf16 %v139_v25, %v139_v25  ;;  %v256_v29 = vpop.f32.mrb[3].mxu0 }
 0x215   :  { %260 = vmatmul.mubr.msk.bf16.vlgmr.msra.gmra.mrb[0].mxu1 %vm160_vm3, %v144_v28 }
 0x2e8   :  { %v198_v31 = vpop.f32.mrb[0].mxu1 }
 0x2e9   :  { %v199_v32 = vadd.f32 %v234_v30, %v198_v31  ;;  %v261_v33 = vpop.f32.mrb[1].mxu1 }
 0x2ea   :  { %v201_v34 = vpop.f32.mrb[2].mxu1 }
 0x2eb   :  { %v237_v35 = vmul.f32 -1.442695, %v199_v32  ;;  %v262_v36 = vpop.f32.mrb[3].mxu1 }
 0x2ed   :  { %273 = vpow2.f32 %v237_v35 }
 0x2f7   :  { %v274_v37 = vpop.eup %273 }
 0x2f8   :  { %v207_v38 = vadd.f32 1.0, %v274_v37 }
 0x2fa   :  { %275 = vrcp.f32 %v207_v38 }
 0x304   :  { %v276_v39 = vpop.eup %275 }
 0x305   :  { %211 = vst.msk [vmem:[#allocation2] sm:$0x3] %vm210_vm4, %v276_v39 }
 0x306   :  { %288 = shalt.err (!%p285_p4)
}
 0x307   :  { %s289_s19 = scalar_lea.hbm %s393_s7, 32 }
 0x308   :  { %p290_p5 = scmp.ne.s32.totalorder %s393_s7, %s289_s19  ;;  %p293_p6 = scmp.lt.u32.totalorder %s289_s19, %s393_s7 }
 0x30a   :  { %p295_p7 = pnand %p293_p6, %p290_p5 }
 0x30c   :  { %298 = shalt.err (!%p295_p7)
}
 0x30d   :  { %221 = dma.vmem_to_hbm [thread:$0]  %s219_s5, 32, %s393_s7, [#allocation3]  }
 0x30e   :  { %299 = dma.done.wait [#allocation3], 32  }
 0x30f   :  { %300 = vsyncadd [#allocation3], 4294967264 }
 0x310   :  { %225 = vsyncpa [#allocation3], 1 }

// kernel: deit_forward.4
= control target key start
LH: loop header
LB: loop body
LE: loop exit
PB: predicated region body
PF: predicated region fallthrough
CT: control target
= control target key end

     0   :  { %s2999_s29 = smov 0   ;;  %s3414_s0 = inlined_call_operand.vmem [shape: f32[2,5,64], index: 0, kind: input, shape index: {}]   ;;  %s3415_s1 = inlined_call_operand.vmem [shape: f32[1,64], index: 1, kind: input, shape index: {}]   ;;  %s3416_s2 = inlined_call_operand.vmem [shape: f32[1,64], index: 2, kind: input, shape index: {}]   ;;  %s3417_s3 = inlined_call_operand.vmem [shape: bf16[64,192], index: 3, kind: input, shape index: {}]   ;;  %s3418_s4 = inlined_call_operand.vmem [shape: f32[1,192], index: 4, kind: input, shape index: {}]   ;;  %s3419_s5 = inlined_call_operand.vmem [shape: bf16[64,64], index: 5, kind: input, shape index: {}]   ;;  %s3420_s6 = inlined_call_operand.vmem [shape: f32[1,64], index: 6, kind: input, shape index: {}]   ;;  %s3421_s7 = inlined_call_operand.vmem [shape: f32[1,64], index: 7, kind: input, shape index: {}]   ;;  %s3422_s8 = inlined_call_operand.vmem [shape: f32[1,64], index: 8, kind: input, shape index: {}]   ;;  %s3423_s9 = inlined_call_operand.vmem [shape: bf16[64,256], index: 9, kind: input, shape index: {}]   ;;  %s3424_s10 = inlined_call_operand.vmem [shape: f32[1,256], index: 10, kind: input, shape index: {}]   ;;  %s3425_s11 = inlined_call_operand.vmem [shape: bf16[256,64], index: 11, kind: input, shape index: {}]   ;;  %s3426_s12 = inlined_call_operand.vmem [shape: f32[1,64], index: 12, kind: input, shape index: {}]   ;;  %s3427_s13 = inlined_call_operand.vmem [shape: f32[1,64], index: 13, kind: input, shape index: {}]   ;;  %s3428_s14 = inlined_call_operand.vmem [shape: f32[1,64], index: 14, kind: input, shape index: {}]   ;;  %s3429_s15 = inlined_call_operand.vmem [shape: bf16[64,192], index: 15, kind: input, shape index: {}]   ;;  %s3430_s16 = inlined_call_operand.vmem [shape: f32[1,192], index: 16, kind: input, shape index: {}]   ;;  %s3431_s17 = inlined_call_operand.vmem [shape: bf16[64,64], index: 17, kind: input, shape index: {}]   ;;  %s3432_s18 = inlined_call_operand.vmem [shape: f32[1,64], index: 18, kind: input, shape index: {}]   ;;  %s3433_s19 = inlined_call_operand.vmem [shape: f32[1,64], index: 19, kind: input, shape index: {}]   ;;  %s3434_s20 = inlined_call_operand.vmem [shape: f32[1,64], index: 20, kind: input, shape index: {}]   ;;  %s3435_s21 = inlined_call_operand.vmem [shape: bf16[64,256], index: 21, kind: input, shape index: {}]   ;;  %s3436_s22 = inlined_call_operand.vmem [shape: f32[1,256], index: 22, kind: input, shape index: {}]   ;;  %s3437_s23 = inlined_call_operand.vmem [shape: bf16[256,64], index: 23, kind: input, shape index: {}]   ;;  %s3438_s24 = inlined_call_operand.vmem [shape: f32[1,64], index: 24, kind: input, shape index: {}]   ;;  %s3439_s25 = inlined_call_operand.vmem [shape: f32[2,5,64], index: 25, kind: output, shape index: {}]  }
   0x1   :  { %3448 = sst [smem:[#allocation2_spill]] %s3414_s0 }
   0x2   :  { %3449 = sst [smem:[#allocation3_spill]] %s3415_s1 }
   0x3   :  { %3450 = sst [smem:[#allocation4_spill]] %s3416_s2 }
   0x4   :  { %3451 = sst [smem:[#allocation5_spill]] %s3417_s3 }
   0x5   :  { %3452 = sst [smem:[#allocation6_spill]] %s3418_s4 }
   0x6   :  { %3453 = sst [smem:[#allocation7_spill]] %s3419_s5 }
   0x7   :  { %3454 = sst [smem:[#allocation8_spill]] %s3420_s6 }
   0x8   :  { %3455 = sst [smem:[#allocation9_spill]] %s3421_s7 }
   0x9   :  { %3456 = sst [smem:[#allocation10_spill]] %s3422_s8 }
   0xa   :  { %3457 = sst [smem:[#allocation11_spill]] %s3423_s9 }
   0xb LB: > { %s2458_s2 = sadd.s32 4294967295, %s2860_s29   ;;  %p2462_p0 = scmp.ge.s32.totalorder %s2860_s29, 1  ;;  %s2860_s29 = sphi %s2999_s29, %s35_s29  }
   0xc   : > { %p686_p1 = scmp.lt.s32.totalorder %s2860_s29, 3 }
   0xe   : > { %p687_p2 = pnand %p2462_p0, %p686_p1 }
   0xf   : > { %p752_p3 = scmp.lt.s32.totalorder (!%p687_p2), %s2458_s2, 1  ;;  %vm826_vm0 = vcmask (!%p687_p2), 520192   ;;  %s3458_s3 = sld [smem:[#allocation2_spill]] (!%p687_p2)  ;;  %v2862_v11 = vmov (!%p687_p2), 0   ;;  %vm907_vm1 = vcmask (!%p687_p2), 523264   ;;  %v2863_v26 = vmov (!%p687_p2), 0.0  }
  0x10   : > { %690 = sbr.rel (%p687_p2) target bundleno = 4826 (0x12da), region = 120  ;;  %s3459_s27 = sld [smem:[#allocation5_spill]] (!%p687_p2)  ;;  %943 = vmatprep.mubr.bf16.mxu0 (!%p687_p2), %v2862_v11  ;;  %2645 = vmatprep.subr.bf16.mxu1 (!%p687_p2), %v2863_v26  ;;  %v857_v27 = vlaneseq (!%p687_p2)  ;;  %vm1023_vm2 = vcmask (!%p687_p2), 1041408   ;;  %vm2864_vm3 = vmmov (!%p687_p2), 0   ;;  %vm1024_vm4 = vcmask (!%p687_p2), 1042432  }
  0x11   : > { %s3460_s30 = sld [smem:[#allocation3_spill]] (!%p687_p2)  ;;  %s3462_s4 = sld [smem:[#allocation6_spill]] (!%p687_p2)  ;;  %2647 = vmatprep.mubr.msk.bf16.mxu1 (!%p687_p2), %vm2864_vm3, %v2863_v26  ;;  %v2865_v35 = vmov (!%p687_p2), 65535   ;;  %vm958_vm5 = vcmask (!%p687_p2), 261120   ;;  %vm1005_vm6 = vcmask (!%p687_p2), 36864   ;;  %vm1019_vm7 = vcmask (!%p687_p2), 39936  }
  0x12   : > { %v858_v28 = vshrl.u32 (!%p687_p2), %v857_v27, 7  ;;  %v1025_v36 = vsel (!%p687_p2), %vm1023_vm2, 4294967295, %v2865_v35  ;;  %s3447_s28 = smov (!%p687_p2), 64   ;;  %s3444_s9 = smov (!%p687_p2), 96  }
  0x13   : > { %v3068_v44 = vsel (!%p687_p2), %vm1024_vm4, %v1025_v36, 0  ;;  %s3446_s5 = smov (!%p687_p2), 32   ;;  %s3463_s7 = sld [smem:[#allocation7_spill]] (!%p687_p2) }
  0x14   : > { %v3055_v29 = vsub.s32 (!%p687_p2), 0, %v858_v28  ;;  %v3060_v31 = vsub.s32 (!%p687_p2), 1, %v858_v28  ;;  %s3467_s8 = sld [smem:[#allocation10_spill]] (!%p687_p2)  ;;  %s3468_s1 = smov (!%p687_p2), 64  }
  0x15   : > { %s3470_s0 = smov (!%p687_p2), 96  }
  0x16   : > { %v2734_v7 = vld [vmem:[%s3459_s27 + $0x4] ss:$8 sps:$4 sm:$0xff] (!%p687_p2)   ;;  %v2736_v8 = vld [vmem:[%s3459_s27] ss:$8 sps:$4 sm:$0xff] (!%p687_p2)   ;;  %v2737_v9 = vld [vmem:[%s3459_s27 + $0x14] ss:$8 sps:$4 sm:$0xff] (!%p687_p2)  }
  0x17   : > { %s3473_s2 = smov (!%p752_p3, %s2458_s2), 1  ;;  %911 = vmatprep.subr.bf16.mxu0 %v2734_v7  ;;  %v2739_v10 = vld [vmem:[%s3459_s27 + $0x10] ss:$8 sps:$4 sm:$0xff]   ;;  %v2740_v12 = vld [vmem:[%s3459_s27 + $0x24] ss:$8 sps:$4 sm:$0xff]  }
  0x18   : > { %s3443_s6 = sshll.u32 %s3473_s2, 3  ;;  %912 = vmatpush1.bf16.msra.mxu0 %v2736_v8  ;;  %v2742_v13 = vld [vmem:[%s3459_s27 + $0x20] ss:$8 sps:$4 sm:$0xff]   ;;  %v2743_v14 = vld [vmem:[%s3459_s27 + $0x34] ss:$8 sps:$4 sm:$0xff]  }
  0x19   : > { %s755_s26 = scalar_lea.vmem %s3458_s3, %s3443_s6  ;;  %913 = vmatprep.subr.bf16.mxu0 %v2737_v9  ;;  %v2745_v15 = vld [vmem:[%s3459_s27 + $0x30] ss:$8 sps:$4 sm:$0xff]   ;;  %v2465_v20 = vld [vmem:[%s3460_s30] ss:$0 sm:$0xff] }
  0x1a   : > { %v3015_v0 = vld [vmem:[%s755_s26] sm:$0x1f]  ;;  %s3461_s26 = sld [smem:[#allocation4_spill]] }
  0x1b   : > { %v827_v1 = vsel %vm826_vm0, %v3015_v0, 0.0  ;;  %v772_v30 = vld [vmem:[%s3462_s4] sm:$0x3]  ;;  %s3465_s4 = sld [smem:[#allocation11_spill]] }
  0x1c   : > { %828 = vadd.xlane.f32.xlu0 %v827_v1  ;;  %914 = vmatpush1.bf16.msra.mxu0 %v2739_v10  ;;  %v860_v32 = vrot.slane %v772_v30, %v3055_v29  ;;  %v864_v33 = vrot.slane %v772_v30, %v3060_v31 }
  0x1d   : > { %915 = vmatprep.subr.bf16.mxu0 %v2740_v12 }
  0x20   : > { %916 = vmatpush1.bf16.msra.mxu0 %v2742_v13  ;;  %v2466_v22 = vld [vmem:[%s3461_s26] ss:$0 sm:$0xff]  ;;  %s3464_s26 = sld [smem:[#allocation8_spill]] }
  0x21   : > { %917 = vmatprep.subr.bf16.mxu0 %v2743_v14 }
  0x24   : > { %918 = vmatpush1.bf16.msra.mxu0 %v2745_v15 }
  0x25   : > { %2639 = vmatprep.subr.bf16.mxu0 %v2863_v26 }
  0xa9   : > { %v829_v2 = vpop.xlane.xlu0 %828 }
  0xaa   : > { %v831_v3 = vmul.f32 0.015625, %v829_v2 }
  0xac   : > { %v832_v4 = vsub.f32 %v3015_v0, %v831_v3 }
  0xae   : > { %v833_v5 = vmul.f32 %v832_v4, %v832_v4 }
  0xb0   : > { %v834_v6 = vsel %vm826_vm0, %v833_v5, 0.0 }
  0xb1   : > { %835 = vadd.xlane.f32.xlu0 %v834_v6 }
 0x13e   : > { %v836_v16 = vpop.xlane.xlu0 %835 }
 0x13f   : > { %v837_v17 = vmul.f32 0.015625, %v836_v16 }
 0x141   : > { %v838_v18 = vadd.f32 1e-06, %v837_v17 }
 0x143   : > { %2822 = vrsqrt.f32 %v838_v18 }
 0x14d   : > { %v2823_v19 = vpop.eup %2822 }
 0x14e   : > { %v840_v21 = vmul.f32 %v2823_v19, %v832_v4 }
 0x150   : > { %v847_v23 = vmul.f32 %v2465_v20, %v840_v21  ;;  %v2746_v20 = vld [vmem:[%s3463_s7] sm:$0xff]  }
 0x152   : > { %v854_v24 = vadd.f32 %v2466_v22, %v847_v23  ;;  %v2747_v22 = vld [vmem:[%s3463_s7 + $0x8] sm:$0xff]   ;;  %v2748_v23 = vld [vmem:[%s3463_s7 + $0x10] sm:$0xff]  }
 0x154   : > { %v855_v25 = vpack.c.bf16 %v854_v24, %v854_v24  ;;  %v2749_v24 = vld [vmem:[%s3463_s7 + $0x18] sm:$0xff]  }
 0x156   : > { %2475 = vmatmul.mubr.msk.bf16.vlgmr.msra.gmra.mrb[0].mxu0 %vm907_vm1, %v855_v25 }
 0x157   : > { %2641 = vmatprep.mubr.msk.bf16.mxu0 %vm2864_vm3, %v2863_v26 }
 0x229   : > { %v945_v34 = vpop.f32.mrb[0].mxu0 }
 0x22a   : > { %v946_v37 = vadd.f32 %v945_v34, %v860_v32  ;;  %v947_v38 = vpop.f32.mrb[1].mxu0 }
 0x22b   : > { %v948_v39 = vadd.f32 %v947_v38, %v864_v33  ;;  %v949_v40 = vpop.f32.mrb[2].mxu0 }
 0x22c   : > { %v952_v41 = vmul.f32 0.17677669, %v946_v37  ;;  %v950_v42 = vpop.f32.mrb[3].mxu0  ;;  %v954_v43 = vpack.c.bf16 %v946_v37, %v946_v37 }
 0x22d   : > { %v1018_v45 = vpack.c.bf16 %v948_v39, %v948_v39 }
 0x22e   : > { %v953_v46 = vpack.c.bf16 %v952_v41, %v952_v41  ;;  %956 = vrot.lane.b32.xlu1 %v954_v43, %s3447_s28 }
 0x22f   : > { %v1028_v47 = vand.u32 %v3068_v44, %v1018_v45 }
 0x230   : > { %1072 = vrot.lane.b32.xlu0 %v953_v46, %s3444_s9 }
 0x231   : > { %2646 = vmatpush3.bf16.msra.mxu1 %v1028_v47 }
 0x232   : > { %1074 = vrot.lane.b32.xlu1 %v954_v43, %s3446_s5  ;;  %2657 = vmatprep.subr.bf16.mxu1 %v2863_v26  ;;  %s3471_s5 = sshll.u32 %s3473_s2, 3 }
 0x2a0   : > { %v957_v48 = vpop.permute.xlu1 %956 }
 0x2a1   : > { %v963_v49 = vsel %vm958_vm5, %v957_v48, 0 }
 0x2a2   : > { %2640 = vmatpush3.bf16.xpose.msra.mxu0 %v963_v49  ;;  %v1073_v52 = vpop.permute.xlu0 %1072 }
 0x2a3   : > { %2651 = vmatprep.subr.bf16.mxu0 %v2863_v26 }
 0x2a4   : > { %v1075_v50 = vpop.permute.xlu1 %1074 }
 0x2a5   : > { %v1080_v51 = vsel %vm958_vm5, %v1075_v50, 0 }
 0x2a9   : > { %2642 = vmatmul.mubr.msk.bf16.vlgmr.msra.gmra.mrb[4].mxu0 %vm958_vm5, %v953_v46  ;;  %v2486_v46 = vld [vmem:[%s3464_s26] ss:$0 sm:$0xff] }
 0x2aa   : > { %2652 = vmatpush3.bf16.xpose.msra.mxu0 %v1080_v51  ;;  %2653 = vmatprep.mubr.msk.bf16.mxu0 %vm2864_vm3, %v2863_v26 }
 0x2ab   : > { %2663 = vmatprep.subr.bf16.mxu0 %v2863_v26 }
 0x2b1   : > { %2654 = vmatmul.mubr.msk.bf16.vlgmr.msra.gmra.mrb[8].mxu0 %vm958_vm5, %v1073_v52 }
 0x2b2   : > { %2667 = vmatprep.mubr.msk.bf16.mxu0 %vm2864_vm3, %v2863_v26  ;;  %2664 = vmatpush3.bf16.msra.mxu0 %v2748_v23  ;;  %v2773_v23 = vld [vmem:[%s3425_s11 + $0x28] sm:$0xff]  }
 0x2b3   : > { %2665 = vmatprep.subr.bf16.mxu0 %v2863_v26 }
 0x2b6   : > { %2666 = vmatpush3.bf16.msra.mxu0 %v2749_v24  ;;  %v2774_v24 = vld [vmem:[%s3425_s11 + $0x70] sm:$0xff]  }
 0x37c   : > { %v999_v53 = vpop.f32.mrb[4].mxu0 }
 0x37d   : > { %v2643_v54 = vpop.f32.mrb[5].mxu0  ;;  %v1006_v55 = vsel %vm1005_vm6, %v999_v53, -inf }
 0x37e   : > { %1007 = vmax.xlane.f32.xlu1 %v1006_v55  ;;  %v1002_v56 = vpop.f32.mrb[6].mxu0 }
 0x37f   : > { %v2644_v57 = vpop.f32.mrb[7].mxu0 }
 0x380   : > { %v2752_v57 = vld [vmem:[%s3465_s4 + $0x4] ss:$8 sps:$4 sm:$0xff]  }
 0x381   : > { %1384 = vmatprep.subr.bf16.mxu0 %v2752_v57 }
 0x384   : > { %v1116_v58 = vpop.f32.mrb[8].mxu0 }
 0x385   : > { %v2655_v59 = vpop.f32.mrb[9].mxu0  ;;  %v1122_v60 = vsel %vm1005_vm6, %v1116_v58, -inf }
 0x386   : > { %1123 = vmax.xlane.f32.xlu0 %v1122_v60  ;;  %v1119_v61 = vpop.f32.mrb[10].mxu0  ;;  %v2753_v59 = vld [vmem:[%s3465_s4 + $0x10] ss:$8 sps:$4 sm:$0xff]   ;;  %v2758_v60 = vld [vmem:[%s3465_s4 + $0x24] ss:$8 sps:$4 sm:$0xff]  }
 0x387   : > { %v2656_v62 = vpop.f32.mrb[11].mxu0  ;;  %v2756_v61 = vld [vmem:[%s3465_s4 + $0x20] ss:$8 sps:$4 sm:$0xff]  }
 0x388   : > { %v2761_v62 = vld [vmem:[%s3465_s4 + $0x34] ss:$8 sps:$4 sm:$0xff]  }
 0x40b   : > { %v1008_v63 = vpop.xlane.xlu1 %1007 }
 0x40c   : > { %v1009_v1 = vsub.f32 %v999_v53, %v1008_v63  ;;  %v2759_v63 = vld [vmem:[%s3465_s4 + $0x30] ss:$8 sps:$4 sm:$0xff]  }
 0x40e   : > { %v1010_v2 = vmul.f32 1.442695, %v1009_v1 }
 0x410   : > { %2824 = vpow2.f32 %v1010_v2 }
 0x413   : > { %v1124_v3 = vpop.xlane.xlu0 %1123 }
 0x414   : > { %v1125_v4 = vsub.f32 %v1116_v58, %v1124_v3  ;;  %v2755_v58 = vld [vmem:[%s3465_s4 + $0x14] ss:$8 sps:$4 sm:$0xff]  }
 0x416   : > { %v1126_v5 = vmul.f32 1.442695, %v1125_v4 }
 0x418   : > { %2826 = vpow2.f32 %v1126_v5 }
 0x41a   : > { %v2825_v6 = vpop.eup %2824 }
 0x41b   : > { %v1012_v7 = vsel %vm1005_vm6, %v2825_v6, 0.0 }
 0x41c   : > { %1013 = vadd.xlane.f32.xlu1 %v1012_v7  ;;  %v2488_v7 = vld [vmem:[%s3467_s8] ss:$0 sm:$0xff]  ;;  %s3469_s8 = smov 32  }
 0x422   : > { %v2827_v8 = vpop.eup %2826 }
 0x423   : > { %v1128_v9 = vsel %vm1005_vm6, %v2827_v8, 0.0 }
 0x424   : > { %1129 = vadd.xlane.f32.xlu1 %v1128_v9 }
 0x435   : > { %1135 = vrot.lane.b32.xlu1 %v1018_v45, %s3444_s9  ;;  %s3466_s9 = sld [smem:[#allocation9_spill]] }
 0x43b   : > { %v2487_v5 = vld [vmem:[%s3466_s9] ss:$0 sm:$0xff] }
 0x4a9   : > { %v1014_v10 = vpop.xlane.xlu1 %1013 }
 0x4aa   : > { %2828 = vrcp.f32 %v1014_v10 }
 0x4b1   : > { %v1130_v12 = vpop.xlane.xlu1 %1129 }
 0x4b2   : > { %2830 = vrcp.f32 %v1130_v12  ;;  %v2762_v12 = vld [vmem:[%s3425_s11 + $0x40] sm:$0xff]  }
 0x4b4   : > { %v2829_v13 = vpop.eup %2828 }
 0x4b5   : > { %v1136_v14 = vpop.permute.xlu1 %1135  ;;  %v1016_v15 = vmul.f32 %v2829_v13, %v2825_v6  ;;  %v2763_v13 = vld [vmem:[%s3425_s11] sm:$0xff]  }
 0x4b6   : > { %v1141_v16 = vand.u32 %v1136_v14, %v3068_v44  ;;  %v2764_v14 = vld [vmem:[%s3425_s11 + $0x48] sm:$0xff]  }
 0x4b7   : > { %v1017_v17 = vpack.c.bf16 %v1016_v15, %v1016_v15  ;;  %v2765_v15 = vld [vmem:[%s3425_s11 + $0x8] sm:$0xff]  }
 0x4b9   : > { %2648 = vmatmul.mubr.msk.bf16.vlgmr.msra.gmra.mrb[0].mxu1 %vm1019_vm7, %v1017_v17  ;;  %v2767_v17 = vld [vmem:[%s3425_s11 + $0x10] sm:$0xff]  }
 0x4ba   : > { %2658 = vmatpush3.bf16.msra.mxu1 %v1141_v16  ;;  %2659 = vmatprep.mubr.msk.bf16.mxu1 %vm2864_vm3, %v2863_v26  ;;  %v2766_v16 = vld [vmem:[%s3425_s11 + $0x50] sm:$0xff]  }
 0x4bb   : > { %2671 = vmatprep.subr.bf16.mxu1 %v2863_v26 }
 0x4bc   : > { %v2831_v18 = vpop.eup %2830 }
 0x4bd   : > { %v1132_v19 = vmul.f32 %v2831_v18, %v2827_v8  ;;  %v2768_v18 = vld [vmem:[%s3425_s11 + $0x58] sm:$0xff]  }
 0x4bf   : > { %v1133_v21 = vpack.c.bf16 %v1132_v19, %v1132_v19  ;;  %v2769_v19 = vld [vmem:[%s3425_s11 + $0x18] sm:$0xff]  }
 0x4c1   : > { %2660 = vmatmul.mubr.msk.bf16.vlgmr.msra.gmra.mrb[4].mxu1 %vm1019_vm7, %v1133_v21  ;;  %v2771_v21 = vld [vmem:[%s3425_s11 + $0x20] sm:$0xff]  }
 0x4c2   : > { %2672 = vmatpush3.bf16.msra.mxu1 %v2746_v20  ;;  %2675 = vmatprep.mubr.msk.bf16.mxu1 %vm2864_vm3, %v2863_v26  ;;  %v2770_v20 = vld [vmem:[%s3425_s11 + $0x60] sm:$0xff]  }
 0x4c3   : > { %2673 = vmatprep.subr.bf16.mxu1 %v2863_v26 }
 0x4c6   : > { %2674 = vmatpush3.bf16.msra.mxu1 %v2747_v22  ;;  %v2772_v22 = vld [vmem:[%s3425_s11 + $0x68] sm:$0xff]  }
 0x4c7   : > { %2581 = vmatprep.subr.bf16.mxu1 %v2762_v12 }
 0x58c   : > { %v1064_v25 = vpop.f32.mrb[0].mxu1 }
 0x58d   : > { %v1070_v27 = vpack.c.bf16 %v1064_v25, %v1064_v25  ;;  %v2649_v28 = vpop.f32.mrb[1].mxu1  ;;  %v2775_v25 = vld [vmem:[%s3425_s11 + $0x30] sm:$0xff]  }
 0x58e   : > { %v1067_v30 = vpop.f32.mrb[2].mxu1  ;;  %v2777_v28 = vld [vmem:[%s3425_s11 + $0x38] sm:$0xff]  }
 0x58f   : > { %v2650_v32 = vpop.f32.mrb[3].mxu1  ;;  %2676 = vmatmul.mubr.msk.bf16.vlgmr.msra.gmra.mrb[8].mxu1 %vm958_vm5, %v1070_v27  ;;  %v2776_v27 = vld [vmem:[%s3425_s11 + $0x78] sm:$0xff]   ;;  %v792_v30 = vld [vmem:[%s3424_s10] sm:$0x3] }
 0x590   : > { %2582 = vmatpush3.bf16.msra.mxu1 %v2763_v13  ;;  %v1334_v32 = vrot.slane %v792_v30, %v3055_v29  ;;  %v2780_v13 = vld [vmem:[%s3429_s15 + $0x4] ss:$8 sps:$4 sm:$0xff]  }
 0x591   : > { %2583 = vmatprep.subr.bf16.mxu1 %v2764_v14  ;;  %v2783_v14 = vld [vmem:[%s3429_s15 + $0x14] ss:$8 sps:$4 sm:$0xff]  }
 0x594   : > { %v1177_v33 = vpop.f32.mrb[4].mxu1  ;;  %2584 = vmatpush3.bf16.msra.mxu1 %v2765_v15  ;;  %v2781_v15 = vld [vmem:[%s3429_s15 + $0x10] ss:$8 sps:$4 sm:$0xff]  }
 0x595   : > { %v1183_v34 = vpack.c.bf16 %v1177_v33, %v1177_v33  ;;  %v2661_v35 = vpop.f32.mrb[5].mxu1  ;;  %2585 = vmatprep.subr.bf16.mxu1 %v2766_v16  ;;  %v1338_v33 = vrot.slane %v792_v30, %v3060_v31  ;;  %v2786_v16 = vld [vmem:[%s3429_s15 + $0x24] ss:$8 sps:$4 sm:$0xff]  }
 0x596   : > { %v1180_v36 = vpop.f32.mrb[6].mxu1 }
 0x597   : > { %v2662_v37 = vpop.f32.mrb[7].mxu1  ;;  %2668 = vmatmul.mubr.msk.bf16.vlgmr.msra.gmra.mrb[12].mxu0 %vm958_vm5, %v1183_v34 }
 0x598   : > { %1416 = vmatprep.mubr.bf16.mxu0 %v2862_v11  ;;  %2586 = vmatpush3.bf16.msra.mxu1 %v2767_v17  ;;  %v2784_v17 = vld [vmem:[%s3429_s15 + $0x20] ss:$8 sps:$4 sm:$0xff]  }
 0x599   : > { %2587 = vmatprep.subr.bf16.mxu1 %v2768_v18  ;;  %v2789_v18 = vld [vmem:[%s3429_s15 + $0x34] ss:$8 sps:$4 sm:$0xff]  }
 0x59c   : > { %2588 = vmatpush3.bf16.msra.mxu1 %v2769_v19  ;;  %v2787_v19 = vld [vmem:[%s3429_s15 + $0x30] ss:$8 sps:$4 sm:$0xff]  }
 0x59d   : > { %2589 = vmatprep.subr.bf16.mxu1 %v2770_v20 }
 0x5a0   : > { %2590 = vmatpush3.bf16.msra.mxu1 %v2771_v21 }
 0x5a1   : > { %2591 = vmatprep.subr.bf16.mxu1 %v2772_v22 }
 0x5a4   : > { %2592 = vmatpush3.bf16.msra.mxu1 %v2773_v23 }
 0x5a5   : > { %2593 = vmatprep.subr.bf16.mxu1 %v2774_v24  ;;  %v2515_v24 = vld [vmem:[%s3427_s13] ss:$0 sm:$0xff] }
 0x5a8   : > { %2594 = vmatpush3.bf16.msra.mxu1 %v2775_v25 }
 0x5a9   : > { %2595 = vmatprep.subr.bf16.mxu1 %v2776_v27  ;;  %v2516_v27 = vld [vmem:[%s3428_s14] ss:$0 sm:$0xff] }
 0x5ac   : > { %2596 = vmatpush3.bf16.msra.mxu1 %v2777_v28 }
 0x5ad   : > { %2685 = vmatprep.subr.bf16.mxu1 %v2863_v26 }
 0x662   : > { %v1288_v38 = vpop.f32.mrb[8].mxu1 }
 0x663   : > { %v2677_v39 = vpop.f32.mrb[9].mxu1 }
 0x664   : > { %v1291_v40 = vpop.f32.mrb[10].mxu1 }
 0x665   : > { %v2678_v41 = vpop.f32.mrb[11].mxu1 }
 0x66a   : > { %v1233_v42 = vpop.f32.mrb[12].mxu0 }
 0x66b   : > { %v1289_v43 = vadd.f32 %v1288_v38, %v1233_v42  ;;  %v2669_v45 = vpop.f32.mrb[13].mxu0 }
 0x66c   : > { %v1236_v47 = vpop.f32.mrb[14].mxu0 }
 0x66d   : > { %v1294_v48 = vadd.f32 %v1289_v43, %v3015_v0  ;;  %v2670_v49 = vpop.f32.mrb[15].mxu0  ;;  %v2750_v0 = vld [vmem:[%s3465_s4] ss:$8 sps:$4 sm:$0xff]  }
 0x66e   : > { %1385 = vmatpush1.bf16.msra.mxu0 %v2750_v0 }
 0x66f   : > { %v3119_v50 = vadd.f32 %v2486_v46, %v1294_v48  ;;  %1386 = vmatprep.subr.bf16.mxu0 %v2755_v58 }
 0x671   : > { %v1302_v51 = vsel %vm826_vm0, %v3119_v50, 0.0 }
 0x672   : > { %1303 = vadd.xlane.f32.xlu0 %v1302_v51  ;;  %1387 = vmatpush1.bf16.msra.mxu0 %v2753_v59 }
 0x673   : > { %1388 = vmatprep.subr.bf16.mxu0 %v2758_v60 }
 0x676   : > { %1389 = vmatpush1.bf16.msra.mxu0 %v2756_v61 }
 0x677   : > { %1390 = vmatprep.subr.bf16.mxu0 %v2761_v62  ;;  %v2498_v62 = vld [vmem:[%s3426_s12] ss:$0 sm:$0xff] }
 0x67a   : > { %1391 = vmatpush1.bf16.msra.mxu0 %v2759_v63 }
 0x67b   : > { %1734 = vmatprep.subr.bf16.mxu0 %v2780_v13 }
 0x6ff   : > { %v1304_v52 = vpop.xlane.xlu0 %1303 }
 0x700   : > { %v1305_v53 = vmul.f32 0.015625, %v1304_v52 }
 0x702   : > { %v1306_v54 = vsub.f32 %v3119_v50, %v1305_v53 }
 0x704   : > { %v1307_v55 = vmul.f32 %v1306_v54, %v1306_v54 }
 0x706   : > { %v1308_v56 = vsel %vm826_vm0, %v1307_v55, 0.0 }
 0x707   : > { %1309 = vadd.xlane.f32.xlu0 %v1308_v56 }
 0x794   : > { %v1310_v1 = vpop.xlane.xlu0 %1309 }
 0x795   : > { %v1311_v2 = vmul.f32 0.015625, %v1310_v1 }
 0x797   : > { %v1312_v3 = vadd.f32 1e-06, %v1311_v2 }
 0x799   : > { %2832 = vrsqrt.f32 %v1312_v3 }
 0x7a3   : > { %v2833_v4 = vpop.eup %2832 }
 0x7a4   : > { %v1314_v6 = vmul.f32 %v2833_v4, %v1306_v54 }
 0x7a6   : > { %v1321_v8 = vmul.f32 %v2487_v5, %v1314_v6 }
 0x7a8   : > { %v1328_v9 = vadd.f32 %v2488_v7, %v1321_v8 }
 0x7aa   : > { %v1329_v10 = vpack.c.bf16 %v1328_v9, %v1328_v9 }
 0x7ac   : > { %2497 = vmatmul.mubr.msk.bf16.vlgmr.msra.gmra.mrb[16].mxu0 %vm907_vm1, %v1329_v10 }
 0x7ad   : > { %1766 = vmatprep.mubr.bf16.mxu0 %v2862_v11 }
 0x87f   : > { %v1418_v34 = vpop.f32.mrb[16].mxu0 }
 0x880   : > { %v1419_v35 = vadd.f32 %v1418_v34, %v1334_v32  ;;  %v1420_v36 = vpop.f32.mrb[17].mxu0 }
 0x881   : > { %v1421_v37 = vadd.f32 %v1420_v36, %v1338_v33  ;;  %v1422_v38 = vpop.f32.mrb[18].mxu0  ;;  %v1598_v33 = vld [vmem:[%s3430_s16] sm:$0x3] }
 0x882   : > { %v1427_v39 = vmul.f32 0.044715, %v1419_v35  ;;  %v1423_v40 = vpop.f32.mrb[19].mxu0  ;;  %v1425_v54 = vmul.f32 0.5, %v1419_v35  ;;  %v1684_v34 = vrot.slane %v1598_v33, %v3055_v29 }
 0x883   : > { %v1428_v41 = vmul.f32 0.044715, %v1421_v37  ;;  %v1426_v56 = vmul.f32 0.5, %v1421_v37 }
 0x884   : > { %v1429_v42 = vmul.f32 %v1427_v39, %v1419_v35 }
 0x885   : > { %v1430_v43 = vmul.f32 %v1428_v41, %v1421_v37 }
 0x886   : > { %v1431_v45 = vmul.f32 %v1429_v42, %v1419_v35 }
 0x887   : > { %v1432_v46 = vmul.f32 %v1430_v43, %v1421_v37 }
 0x888   : > { %v1433_v47 = vadd.f32 %v1431_v45, %v1419_v35  ;;  %v1688_v35 = vrot.slane %v1598_v33, %v3060_v31 }
 0x889   : > { %v1434_v48 = vadd.f32 %v1432_v46, %v1421_v37 }
 0x88a   : > { %v1435_v49 = vmul.f32 0.7978846, %v1433_v47 }
 0x88b   : > { %v1436_v51 = vmul.f32 0.7978846, %v1434_v48 }
 0x88c   : > { %2834 = vtanh.f32 %v1435_v49 }
 0x88d   : > { %2836 = vtanh.f32 %v1436_v51 }
 0x896   : > { %v2835_v52 = vpop.eup %2834 }
 0x897   : > { %v2837_v53 = vpop.eup %2836  ;;  %v1439_v55 = vadd.f32 1.0, %v2835_v52 }
 0x898   : > { %v1440_v57 = vadd.f32 1.0, %v2837_v53 }
 0x899   : > { %v1441_v0 = vmul.f32 %v1439_v55, %v1425_v54 }
 0x89a   : > { %v1442_v58 = vmul.f32 %v1440_v57, %v1426_v56 }
 0x89b   : > { %v1443_v60 = vpack.c.bf16 %v1441_v0, %v1441_v0 }
 0x89c   : > { %v1444_v59 = vpack.c.bf16 %v1442_v58, %v1442_v58 }
 0x89e   : > { %1579 = vmatprep.mubr.bf16.mxu1 %v1444_v59 }
 0x89f   : > { %1580 = vmatmul.mubr.bf16.vlgmr.msra.gmra.mrb[12].mxu1 %v1443_v60 }
 0x8a0   : > { %2687 = vmatprep.mubr.msk.bf16.mxu1 %vm2864_vm3, %v2863_v26 }
 0x972   : > { %v2597_v61 = vpop.f32.mrb[12].mxu1 }
 0x973   : > { %v2598_v63 = vpop.f32.mrb[13].mxu1 }
 0x974   : > { %v2599_v1 = vadd.f32 %v2598_v63, %v2597_v61  ;;  %v2600_v2 = vpop.f32.mrb[14].mxu1 }
 0x975   : > { %v2601_v3 = vpop.f32.mrb[15].mxu1 }
 0x976   : > { %v1582_v4 = vadd.f32 %v2599_v1, %v2498_v62 }
 0x978   : > { %v3217_v5 = vadd.f32 %v1582_v4, %v3119_v50  ;;  %v2778_v50 = vld [vmem:[%s3429_s15] ss:$8 sps:$4 sm:$0xff]  }
 0x979   : > { %1735 = vmatpush1.bf16.msra.mxu0 %v2778_v50 }
 0x97a   : > { %v1652_v6 = vsel %vm826_vm0, %v3217_v5, 0.0  ;;  %1736 = vmatprep.subr.bf16.mxu0 %v2783_v14 }
 0x97b   : > { %1653 = vadd.xlane.f32.xlu0 %v1652_v6 }
 0x97d   : > { %1737 = vmatpush1.bf16.msra.mxu0 %v2781_v15 }
 0x97e   : > { %1738 = vmatprep.subr.bf16.mxu0 %v2786_v16 }
 0x981   : > { %1739 = vmatpush1.bf16.msra.mxu0 %v2784_v17 }
 0x982   : > { %1740 = vmatprep.subr.bf16.mxu0 %v2789_v18 }
 0x985   : > { %1741 = vmatpush1.bf16.msra.mxu0 %v2787_v19 }
 0x986   : > { %2679 = vmatprep.subr.bf16.mxu0 %v2863_v26 }
 0xa08   : > { %v1654_v7 = vpop.xlane.xlu0 %1653 }
 0xa09   : > { %v1655_v8 = vmul.f32 0.015625, %v1654_v7 }
 0xa0b   : > { %v1656_v9 = vsub.f32 %v3217_v5, %v1655_v8 }
 0xa0d   : > { %v1657_v10 = vmul.f32 %v1656_v9, %v1656_v9 }
 0xa0f   : > { %v1658_v12 = vsel %vm826_vm0, %v1657_v10, 0.0 }
 0xa10   : > { %1659 = vadd.xlane.f32.xlu1 %v1658_v12 }
 0xa9d   : > { %v1660_v20 = vpop.xlane.xlu1 %1659 }
 0xa9e   : > { %v1661_v21 = vmul.f32 0.015625, %v1660_v20  ;;  %v2790_v20 = vld [vmem:[%s3431_s17] sm:$0xff]  }
 0xaa0   : > { %v1662_v22 = vadd.f32 1e-06, %v1661_v21 }
 0xaa2   : > { %2838 = vrsqrt.f32 %v1662_v22  ;;  %v2792_v22 = vld [vmem:[%s3431_s17 + $0x10] sm:$0xff]  }
 0xaac   : > { %v2839_v23 = vpop.eup %2838 }
 0xaad   : > { %v1664_v25 = vmul.f32 %v2839_v23, %v1656_v9  ;;  %v2793_v23 = vld [vmem:[%s3431_s17 + $0x18] sm:$0xff]  }
 0xaaf   : > { %v1671_v28 = vmul.f32 %v2515_v24, %v1664_v25 }
 0xab1   : > { %v1678_v30 = vadd.f32 %v2516_v27, %v1671_v28 }
 0xab3   : > { %v1679_v32 = vpack.c.bf16 %v1678_v30, %v1678_v30 }
 0xab5   : > { %2525 = vmatmul.mubr.msk.bf16.vlgmr.msra.gmra.mrb[20].mxu0 %vm907_vm1, %v1679_v32 }
 0xab6   : > { %2681 = vmatprep.mubr.msk.bf16.mxu0 %vm2864_vm3, %v2863_v26 }
 0xb88   : > { %v1768_v36 = vpop.f32.mrb[20].mxu0 }
 0xb89   : > { %v1769_v37 = vadd.f32 %v1768_v36, %v1684_v34  ;;  %v1770_v38 = vpop.f32.mrb[21].mxu0 }
 0xb8a   : > { %v1771_v39 = vadd.f32 %v1770_v38, %v1688_v35  ;;  %v1772_v40 = vpop.f32.mrb[22].mxu0 }
 0xb8b   : > { %v1777_v41 = vpack.c.bf16 %v1769_v37, %v1769_v37  ;;  %v1773_v42 = vpop.f32.mrb[23].mxu0  ;;  %v1775_v46 = vmul.f32 0.17677669, %v1769_v37 }
 0xb8c   : > { %v1839_v43 = vpack.c.bf16 %v1771_v39, %v1771_v39 }
 0xb8d   : > { %1779 = vrot.lane.b32.xlu0 %v1777_v41, %s3468_s1  ;;  %v1776_v47 = vpack.c.bf16 %v1775_v46, %v1775_v46 }
 0xb8e   : > { %v1844_v45 = vand.u32 %v1839_v43, %v3068_v44 }
 0xb90   : > { %2686 = vmatpush3.bf16.msra.mxu1 %v1844_v45 }
 0xb91   : > { %1890 = vrot.lane.b32.xlu0 %v1777_v41, %s3469_s8  ;;  %2697 = vmatprep.subr.bf16.mxu1 %v2863_v26 }
 0xb95   : > { %1888 = vrot.lane.b32.xlu0 %v1776_v47, %s3470_s0 }
 0xbff   : > { %v1780_v48 = vpop.permute.xlu0 %1779 }
 0xc00   : > { %v1785_v49 = vsel %vm958_vm5, %v1780_v48, 0 }
 0xc01   : > { %2680 = vmatpush3.bf16.xpose.msra.mxu0 %v1785_v49 }
 0xc02   : > { %2691 = vmatprep.subr.bf16.mxu0 %v2863_v26 }
 0xc03   : > { %v1891_v51 = vpop.permute.xlu0 %1890 }
 0xc04   : > { %v1896_v52 = vsel %vm958_vm5, %v1891_v51, 0 }
 0xc07   : > { %v1889_v53 = vpop.permute.xlu0 %1888 }
 0xc08   : > { %2682 = vmatmul.mubr.msk.bf16.vlgmr.msra.gmra.mrb[24].mxu0 %vm958_vm5, %v1776_v47 }
 0xc09   : > { %2692 = vmatpush3.bf16.xpose.msra.mxu0 %v1896_v52  ;;  %2693 = vmatprep.mubr.msk.bf16.mxu0 %vm2864_vm3, %v2863_v26 }
 0xc0a   : > { %2703 = vmatprep.subr.bf16.mxu0 %v2863_v26 }
 0xc10   : > { %2694 = vmatmul.mubr.msk.bf16.vlgmr.msra.gmra.mrb[28].mxu0 %vm958_vm5, %v1889_v53 }
 0xc11   : > { %2707 = vmatprep.mubr.msk.bf16.mxu0 %vm2864_vm3, %v2863_v26  ;;  %2704 = vmatpush3.bf16.msra.mxu0 %v2792_v22  ;;  %v2820_v22 = vld [vmem:[%s3437_s23 + $0x78] sm:$0xff]  }
 0xc12   : > { %2705 = vmatprep.subr.bf16.mxu0 %v2863_v26 }
 0xc15   : > { %2706 = vmatpush3.bf16.msra.mxu0 %v2793_v23  ;;  %v2821_v23 = vld [vmem:[%s3437_s23 + $0x38] sm:$0xff]  }
 0xcdb   : > { %v1821_v54 = vpop.f32.mrb[24].mxu0 }
 0xcdc   : > { %v2683_v55 = vpop.f32.mrb[25].mxu0  ;;  %v1827_v56 = vsel %vm1005_vm6, %v1821_v54, -inf }
 0xcdd   : > { %1828 = vmax.xlane.f32.xlu0 %v1827_v56  ;;  %v1824_v57 = vpop.f32.mrb[26].mxu0  ;;  %v2796_v55 = vld [vmem:[%s3435_s21 + $0x4] ss:$8 sps:$4 sm:$0xff]   ;;  %v2799_v56 = vld [vmem:[%s3435_s21 + $0x14] ss:$8 sps:$4 sm:$0xff]  }
 0xcde   : > { %v2684_v0 = vpop.f32.mrb[27].mxu0  ;;  %2200 = vmatprep.subr.bf16.mxu0 %v2796_v55  ;;  %v2797_v57 = vld [vmem:[%s3435_s21 + $0x10] ss:$8 sps:$4 sm:$0xff]  }
 0xcdf   : > { %v2802_v0 = vld [vmem:[%s3435_s21 + $0x24] ss:$8 sps:$4 sm:$0xff]  }
 0xce3   : > { %v1932_v58 = vpop.f32.mrb[28].mxu0 }
 0xce4   : > { %v2695_v59 = vpop.f32.mrb[29].mxu0  ;;  %v1938_v60 = vsel %vm1005_vm6, %v1932_v58, -inf }
 0xce5   : > { %1939 = vmax.xlane.f32.xlu1 %v1938_v60  ;;  %v1935_v61 = vpop.f32.mrb[30].mxu0  ;;  %v2803_v59 = vld [vmem:[%s3435_s21 + $0x30] ss:$8 sps:$4 sm:$0xff]   ;;  %v2805_v60 = vld [vmem:[%s3435_s21 + $0x34] ss:$8 sps:$4 sm:$0xff]  }
 0xce6   : > { %v2696_v62 = vpop.f32.mrb[31].mxu0 }
 0xd6a   : > { %v1829_v63 = vpop.xlane.xlu0 %1828 }
 0xd6b   : > { %v1830_v1 = vsub.f32 %v1821_v54, %v1829_v63 }
 0xd6d   : > { %v1831_v2 = vmul.f32 1.442695, %v1830_v1 }
 0xd6f   : > { %2840 = vpow2.f32 %v1831_v2  ;;  %v2537_v2 = vld [vmem:[%s3433_s19] ss:$0 sm:$0xff] }
 0xd72   : > { %v1940_v3 = vpop.xlane.xlu1 %1939 }
 0xd73   : > { %v1941_v4 = vsub.f32 %v1932_v58, %v1940_v3  ;;  %v2800_v58 = vld [vmem:[%s3435_s21 + $0x20] ss:$8 sps:$4 sm:$0xff]  }
 0xd75   : > { %v1942_v6 = vmul.f32 1.442695, %v1941_v4  ;;  %v2538_v4 = vld [vmem:[%s3434_s20] ss:$0 sm:$0xff] }
 0xd77   : > { %2842 = vpow2.f32 %v1942_v6 }
 0xd79   : > { %v2841_v7 = vpop.eup %2840 }
 0xd7a   : > { %v1833_v8 = vsel %vm1005_vm6, %v2841_v7, 0.0 }
 0xd7b   : > { %1834 = vadd.xlane.f32.xlu1 %v1833_v8 }
 0xd81   : > { %v2843_v9 = vpop.eup %2842 }
 0xd82   : > { %v1944_v10 = vsel %vm1005_vm6, %v2843_v9, 0.0 }
 0xd83   : > { %1945 = vadd.xlane.f32.xlu1 %v1944_v10  ;;  %v2807_v10 = vld [vmem:[%s3437_s23] sm:$0xff]  }
 0xd94   : > { %1951 = vrot.lane.b32.xlu1 %v1839_v43, %s3470_s0  ;;  %v2536_v43 = vld [vmem:[%s3432_s18] ss:$0 sm:$0xff]  ;;  %s759_s0 = scalar_lea.vmem %s3439_s25, %s3471_s5 }
 0xe08   : > { %v1835_v12 = vpop.xlane.xlu1 %1834 }
 0xe09   : > { %2844 = vrcp.f32 %v1835_v12  ;;  %v2808_v12 = vld [vmem:[%s3437_s23 + $0x48] sm:$0xff]  }
 0xe10   : > { %v1946_v13 = vpop.xlane.xlu1 %1945 }
 0xe11   : > { %2846 = vrcp.f32 %v1946_v13  ;;  %v2809_v13 = vld [vmem:[%s3437_s23 + $0x8] sm:$0xff]  }
 0xe13   : > { %v2845_v50 = vpop.eup %2844 }
 0xe14   : > { %v1837_v14 = vmul.f32 %v2845_v50, %v2841_v7  ;;  %v1952_v15 = vpop.permute.xlu1 %1951  ;;  %v2810_v50 = vld [vmem:[%s3437_s23 + $0x50] sm:$0xff]  }
 0xe15   : > { %v1957_v16 = vand.u32 %v1952_v15, %v3068_v44  ;;  %v2791_v44 = vld [vmem:[%s3431_s17 + $0x8] sm:$0xff]   ;;  %v2812_v15 = vld [vmem:[%s3437_s23 + $0x58] sm:$0xff]  }
 0xe16   : > { %v1838_v17 = vpack.c.bf16 %v1837_v14, %v1837_v14  ;;  %v2811_v14 = vld [vmem:[%s3437_s23 + $0x10] sm:$0xff]  }
 0xe18   : > { %2688 = vmatmul.mubr.msk.bf16.vlgmr.msra.gmra.mrb[16].mxu1 %vm1019_vm7, %v1838_v17  ;;  %v2814_v17 = vld [vmem:[%s3437_s23 + $0x60] sm:$0xff]  }
 0xe19   : > { %2698 = vmatpush3.bf16.msra.mxu1 %v1957_v16  ;;  %2699 = vmatprep.mubr.msk.bf16.mxu1 %vm2864_vm3, %v2863_v26  ;;  %v2813_v16 = vld [vmem:[%s3437_s23 + $0x18] sm:$0xff]  }
 0xe1a   : > { %2711 = vmatprep.subr.bf16.mxu1 %v2863_v26 }
 0xe1b   : > { %v2847_v18 = vpop.eup %2846 }
 0xe1c   : > { %v1948_v19 = vmul.f32 %v2847_v18, %v2843_v9  ;;  %v2806_v9 = vld [vmem:[%s3437_s23 + $0x40] sm:$0xff]  }
 0xe1d   : > { %v2815_v18 = vld [vmem:[%s3437_s23 + $0x20] sm:$0xff]  }
 0xe1e   : > { %v1949_v21 = vpack.c.bf16 %v1948_v19, %v1948_v19  ;;  %v2816_v19 = vld [vmem:[%s3437_s23 + $0x68] sm:$0xff]  }
 0xe20   : > { %2700 = vmatmul.mubr.msk.bf16.vlgmr.msra.gmra.mrb[20].mxu1 %vm1019_vm7, %v1949_v21  ;;  %v2818_v21 = vld [vmem:[%s3437_s23 + $0x70] sm:$0xff]  }
 0xe21   : > { %2712 = vmatpush3.bf16.msra.mxu1 %v2790_v20  ;;  %2715 = vmatprep.mubr.msk.bf16.mxu1 %vm2864_vm3, %v2863_v26  ;;  %v2817_v20 = vld [vmem:[%s3437_s23 + $0x28] sm:$0xff]  }
 0xe22   : > { %2713 = vmatprep.subr.bf16.mxu1 %v2863_v26 }
 0xe25   : > { %2714 = vmatpush3.bf16.msra.mxu1 %v2791_v44  ;;  %v2819_v44 = vld [vmem:[%s3437_s23 + $0x30] sm:$0xff]  }
 0xe26   : > { %2617 = vmatprep.subr.bf16.mxu1 %v2806_v9 }
 0xeeb   : > { %v1880_v24 = vpop.f32.mrb[16].mxu1 }
 0xeec   : > { %v1886_v25 = vpack.c.bf16 %v1880_v24, %v1880_v24  ;;  %v2689_v27 = vpop.f32.mrb[17].mxu1  ;;  %v1618_v24 = vld [vmem:[%s3436_s22] sm:$0x3] }
 0xeed   : > { %v1883_v28 = vpop.f32.mrb[18].mxu1  ;;  %v2154_v27 = vrot.slane %v1618_v24, %v3060_v31 }
 0xeee   : > { %v2690_v30 = vpop.f32.mrb[19].mxu1  ;;  %2716 = vmatmul.mubr.msk.bf16.vlgmr.msra.gmra.mrb[24].mxu1 %vm958_vm5, %v1886_v25  ;;  %v2150_v25 = vrot.slane %v1618_v24, %v3055_v29 }
 0xeef   : > { %2618 = vmatpush3.bf16.msra.mxu1 %v2807_v10 }
 0xef0   : > { %2619 = vmatprep.subr.bf16.mxu1 %v2808_v12 }
 0xef3   : > { %v1993_v32 = vpop.f32.mrb[20].mxu1  ;;  %2620 = vmatpush3.bf16.msra.mxu1 %v2809_v13 }
 0xef4   : > { %v1999_v33 = vpack.c.bf16 %v1993_v32, %v1993_v32  ;;  %v2701_v34 = vpop.f32.mrb[21].mxu1  ;;  %2621 = vmatprep.subr.bf16.mxu1 %v2810_v50 }
 0xef5   : > { %v1996_v35 = vpop.f32.mrb[22].mxu1 }
 0xef6   : > { %v2702_v36 = vpop.f32.mrb[23].mxu1  ;;  %2708 = vmatmul.mubr.msk.bf16.vlgmr.msra.gmra.mrb[32].mxu0 %vm958_vm5, %v1999_v33 }
 0xef7   : > { %2232 = vmatprep.mubr.bf16.mxu0 %v2862_v11  ;;  %2622 = vmatpush3.bf16.msra.mxu1 %v2811_v14 }
 0xef8   : > { %2623 = vmatprep.subr.bf16.mxu1 %v2812_v15 }
 0xefb   : > { %2624 = vmatpush3.bf16.msra.mxu1 %v2813_v16 }
 0xefc   : > { %2625 = vmatprep.subr.bf16.mxu1 %v2814_v17 }
 0xeff   : > { %2626 = vmatpush3.bf16.msra.mxu1 %v2815_v18 }
 0xf00   : > { %2627 = vmatprep.subr.bf16.mxu1 %v2816_v19 }
 0xf03   : > { %2628 = vmatpush3.bf16.msra.mxu1 %v2817_v20 }
 0xf04   : > { %2629 = vmatprep.subr.bf16.mxu1 %v2818_v21 }
 0xf07   : > { %2630 = vmatpush3.bf16.msra.mxu1 %v2819_v44 }
 0xf08   : > { %2631 = vmatprep.subr.bf16.mxu1 %v2820_v22 }
 0xf0b   : > { %2632 = vmatpush3.bf16.msra.mxu1 %v2821_v23 }
 0xfc1   : > { %v2104_v26 = vpop.f32.mrb[24].mxu1 }
 0xfc2   : > { %v2717_v37 = vpop.f32.mrb[25].mxu1 }
 0xfc3   : > { %v2107_v38 = vpop.f32.mrb[26].mxu1 }
 0xfc4   : > { %v2718_v39 = vpop.f32.mrb[27].mxu1 }
 0xfc9   : > { %v2049_v40 = vpop.f32.mrb[32].mxu0 }
 0xfca   : > { %v2105_v41 = vadd.f32 %v2104_v26, %v2049_v40  ;;  %v2709_v42 = vpop.f32.mrb[33].mxu0 }
 0xfcb   : > { %v2052_v45 = vpop.f32.mrb[34].mxu0 }
 0xfcc   : > { %v2110_v46 = vadd.f32 %v2105_v41, %v3217_v5  ;;  %v2710_v47 = vpop.f32.mrb[35].mxu0  ;;  %v2794_v5 = vld [vmem:[%s3435_s21] ss:$8 sps:$4 sm:$0xff]  }
 0xfcd   : > { %2201 = vmatpush1.bf16.msra.mxu0 %v2794_v5  ;;  %v2548_v5 = vld [vmem:[%s3438_s24] ss:$0 sm:$0xff] }
 0xfce   : > { %v3311_v48 = vadd.f32 %v2536_v43, %v2110_v46  ;;  %2202 = vmatprep.subr.bf16.mxu0 %v2799_v56 }
 0xfd0   : > { %v2118_v11 = vsel %vm826_vm0, %v3311_v48, 0.0 }
 0xfd1   : > { %2119 = vadd.xlane.f32.xlu0 %v2118_v11  ;;  %2203 = vmatpush1.bf16.msra.mxu0 %v2797_v57 }
 0xfd2   : > { %2204 = vmatprep.subr.bf16.mxu0 %v2802_v0 }
 0xfd5   : > { %2205 = vmatpush1.bf16.msra.mxu0 %v2800_v58 }
 0xfd6   : > { %2206 = vmatprep.subr.bf16.mxu0 %v2805_v60 }
 0xfd9   : > { %2207 = vmatpush1.bf16.msra.mxu0 %v2803_v59 }
0x105e   : > { %v2120_v49 = vpop.xlane.xlu0 %2119 }
0x105f   : > { %v2121_v51 = vmul.f32 0.015625, %v2120_v49 }
0x1061   : > { %v2122_v52 = vsub.f32 %v3311_v48, %v2121_v51 }
0x1063   : > { %v2123_v53 = vmul.f32 %v2122_v52, %v2122_v52 }
0x1065   : > { %v2124_v54 = vsel %vm826_vm0, %v2123_v53, 0.0 }
0x1066   : > { %2125 = vadd.xlane.f32.xlu1 %v2124_v54 }
0x10f3   : > { %v2126_v61 = vpop.xlane.xlu1 %2125 }
0x10f4   : > { %v2127_v62 = vmul.f32 0.015625, %v2126_v61 }
0x10f6   : > { %v2128_v63 = vadd.f32 1e-06, %v2127_v62 }
0x10f8   : > { %2848 = vrsqrt.f32 %v2128_v63 }
0x1102   : > { %v2849_v1 = vpop.eup %2848 }
0x1103   : > { %v2130_v3 = vmul.f32 %v2849_v1, %v2122_v52 }
0x1105   : > { %v2137_v6 = vmul.f32 %v2537_v2, %v2130_v3 }
0x1107   : > { %v2144_v7 = vadd.f32 %v2538_v4, %v2137_v6 }
0x1109   : > { %v2145_v8 = vpack.c.bf16 %v2144_v7, %v2144_v7 }
0x110b   : > { %2547 = vmatmul.mubr.msk.bf16.vlgmr.msra.gmra.mrb[36].mxu0 %vm907_vm1, %v2145_v8 }
0x11de   : > { %v2234_v28 = vpop.f32.mrb[36].mxu0 }
0x11df   : > { %v2235_v30 = vadd.f32 %v2234_v28, %v2150_v25  ;;  %v2236_v32 = vpop.f32.mrb[37].mxu0 }
0x11e0   : > { %v2237_v33 = vadd.f32 %v2236_v32, %v2154_v27  ;;  %v2238_v34 = vpop.f32.mrb[38].mxu0 }
0x11e1   : > { %v2243_v35 = vmul.f32 0.044715, %v2235_v30  ;;  %v2239_v36 = vpop.f32.mrb[39].mxu0  ;;  %v2241_v46 = vmul.f32 0.5, %v2235_v30 }
0x11e2   : > { %v2244_v26 = vmul.f32 0.044715, %v2237_v33  ;;  %v2242_v11 = vmul.f32 0.5, %v2237_v33 }
0x11e3   : > { %v2245_v37 = vmul.f32 %v2243_v35, %v2235_v30 }
0x11e4   : > { %v2246_v38 = vmul.f32 %v2244_v26, %v2237_v33 }
0x11e5   : > { %v2247_v39 = vmul.f32 %v2245_v37, %v2235_v30 }
0x11e6   : > { %v2248_v40 = vmul.f32 %v2246_v38, %v2237_v33 }
0x11e7   : > { %v2249_v41 = vadd.f32 %v2247_v39, %v2235_v30 }
0x11e8   : > { %v2250_v42 = vadd.f32 %v2248_v40, %v2237_v33 }
0x11e9   : > { %v2251_v43 = vmul.f32 0.7978846, %v2249_v41 }
0x11ea   : > { %v2252_v45 = vmul.f32 0.7978846, %v2250_v42 }
0x11eb   : > { %2850 = vtanh.f32 %v2251_v43 }
0x11ec   : > { %2852 = vtanh.f32 %v2252_v45 }
0x11f5   : > { %v2851_v29 = vpop.eup %2850 }
0x11f6   : > { %v2853_v31 = vpop.eup %2852  ;;  %v2255_v47 = vadd.f32 1.0, %v2851_v29 }
0x11f7   : > { %v2256_v49 = vadd.f32 1.0, %v2853_v31 }
0x11f8   : > { %v2257_v51 = vmul.f32 %v2255_v47, %v2241_v46 }
0x11f9   : > { %v2258_v52 = vmul.f32 %v2256_v49, %v2242_v11 }
0x11fa   : > { %v2259_v54 = vpack.c.bf16 %v2257_v51, %v2257_v51 }
0x11fb   : > { %v2260_v53 = vpack.c.bf16 %v2258_v52, %v2258_v52 }
0x11fd   : > { %2395 = vmatprep.mubr.bf16.mxu1 %v2260_v53 }
0x11fe   : > { %2396 = vmatmul.mubr.bf16.vlgmr.msra.gmra.mrb[28].mxu1 %v2259_v54 }
0x12d1   : > { %v2633_v55 = vpop.f32.mrb[28].mxu1 }
0x12d2   : > { %v2634_v56 = vpop.f32.mrb[29].mxu1 }
0x12d3   : > { %v2635_v57 = vadd.f32 %v2634_v56, %v2633_v55  ;;  %v2636_v0 = vpop.f32.mrb[30].mxu1 }
0x12d4   : > { %v2637_v58 = vpop.f32.mrb[31].mxu1 }
0x12d5   : > { %v2398_v59 = vadd.f32 %v2635_v57, %v2548_v5 }
0x12d7   : > { %v2403_v60 = vadd.f32 %v2398_v59, %v3311_v48 }
0x12d9   : > { %2404 = vst.msk [vmem:[%s759_s0] sm:$0x1f] %vm826_vm0, %v2403_v60 }
0x12da PF: > { %s35_s29 = sadd.s32 1, %s2860_s29  }
0x12db   : > { %p32_p4 = scmp.ge.s32.totalorder %s35_s29, 4  }
0x12dd   :  { %34 = sbr.rel (!%p32_p4) target bundleno = 11 (0xb), region = 150 }

</bundles_post_ra>
